<compile_context>
chip_gen: v7x
topology: tpu7x:2x2x1
jax: 0.10.0
libtpu: 0.0.40
codegen_flags: <defaults>
</compile_context>

<pallas_src>
import math
import numpy as np
import jax
import jax.numpy as jnp
from jax.experimental import pallas as pl
from jax.experimental.pallas import tpu as pltpu

# ---- cfg.Glow.* hyperparameters (small, deterministic) ----
IN_CHANNELS = 8      # cfg.Glow.in_channels
JOINTS      = 16     # cfg.Glow.joints
HIDDEN      = 32     # cfg.Glow.hidden_channels
K_FLOWS     = 2      # cfg.Glow.K
C1 = IN_CHANNELS // 2
C2 = IN_CHANNELS - C1


def _glow_kernel(x_ref,       # (1, C, L)  L = Nt*V, Nt samples packed along lanes
                 adj_ref,     # (L, L)     kron(I_Nt, adj_V), block-diagonal adjacency
                 wa_ref,      # (K, C, C1) fused actnorm+invconv, columns acting on z1
                 wb_ref,      # (K, C, C2) fused actnorm+invconv, columns acting on z2
                 bf_ref,      # (K, C, 1)  fused bias  b' = W' @ actnorm_bias
                 w1_ref,      # (K, H, C1) coupling net layer 1
                 cb1_ref,     # (K, H, 1)
                 w2_ref,      # (K, 2*C2, H) coupling net layer 2
                 cb2_ref,     # (K, 2*C2, 1)
                 z_ref,       # out (1, C, L)
                 obj_ref):    # out (1, 1, L) per-lane (coupling logdet + logp)
    L = x_ref.shape[2]
    adj = adj_ref[...]                                   # (L, L)
    h0 = x_ref[0, :, :].astype(jnp.float32)              # (C, L)
    z1 = h0[:C1, :]
    z2 = h0[C1:, :]
    obj = jnp.zeros((1, L), jnp.float32)                 # per-lane objective accumulator

    for k in range(K_FLOWS):                             # K small & static -> unrolled
        # --- ActNorm + invertible 1x1 conv, folded on host and column-split so the
        #     z1/z2 halves never need to be concatenated:  h = W'_a @ z1 + W'_b @ z2 + b'
        hf = (jnp.dot(wa_ref[k, :, :], z1, preferred_element_type=jnp.float32)
              + jnp.dot(wb_ref[k, :, :], z2, preferred_element_type=jnp.float32)
              + bf_ref[k, :, :])                          # (C, L)
        h1 = hf[:C1, :]
        h2 = hf[C1:, :]

        # --- Affine coupling; NN = 2-layer graph conv on the block-diagonal adjacency.
        # TODO(synk): exact 'gcn'/'locomotion' coupling-net architecture of graph_glow is
        # not in the provided source; approximated with a 2-layer GCN of matching shapes.
        g = jnp.dot(w1_ref[k, :, :], h1, preferred_element_type=jnp.float32)
        g = jnp.dot(g, adj, preferred_element_type=jnp.float32) + cb1_ref[k, :, :]
        g = jnp.maximum(g, 0.0)
        g = jnp.dot(w2_ref[k, :, :], g, preferred_element_type=jnp.float32)
        g = jnp.dot(g, adj, preferred_element_type=jnp.float32) + cb2_ref[k, :, :]

        shift = g[:C2, :]
        pre = g[C2:, :] + 2.0                             # standard Glow affine coupling
        scale = jax.nn.sigmoid(pre)
        # log(sigmoid(pre)) in a -inf-safe form for the logdet term.
        log_scale = jnp.minimum(pre, 0.0) - jnp.log(1.0 + jnp.exp(-jnp.abs(pre)))

        z2 = (h2 + shift) * scale
        z1 = h1
        obj = obj + jnp.sum(log_scale, axis=0, keepdims=True)   # (1, L)

    # --- Block.logp: standard-normal log-likelihood, reduced over channels only
    #     (the per-sample reduction over each sample's V lanes happens in JAX).
    log2pi = jnp.float32(math.log(2.0 * math.pi))
    sumsq = (jnp.sum(z1 * z1, axis=0, keepdims=True)
             + jnp.sum(z2 * z2, axis=0, keepdims=True))
    obj = obj - 0.5 * (jnp.float32(IN_CHANNELS) * log2pi + sumsq)

    z_ref[0, :, :] = jnp.concatenate([z1, z2], axis=0).astype(z_ref.dtype)
    obj_ref[...] = obj.reshape(obj_ref.shape)


def pick_samples_per_tile():
    """128-lane tiles on v5e, 256-lane tiles on v6e / v7x (and as default)."""
    try:
        kind = jax.devices()[0].device_kind.lower()
    except Exception:
        kind = ""
    if "v5 lite" in kind or "v5e" in kind:
        return 8          # 8  * JOINTS = 128 lanes
    return 16             # 16 * JOINTS = 256 lanes


def glow_forward(x, kp):
    """Glow.forward(x, reverse=False) -> (z, loss)."""
    N, C, V = x.shape
    nt = int(kp["nt"])
    L = nt * V
    T = -(-N // nt)                     # number of batch tiles (ceil)
    Np = T * nt

    xf = x.astype(jnp.float32)
    if Np != N:                          # pad batch to a whole number of tiles
        xf = jnp.concatenate([xf, jnp.zeros((Np - N, C, V), jnp.float32)], axis=0)
    # Pack nt samples into the lane axis: (T, C, nt*V), lane index = sample*V + joint.
    xt = xf.reshape(T, nt, C, V).transpose(0, 2, 1, 3).reshape(T, C, L)

    def full_spec(a):
        nd = a.ndim
        return pl.BlockSpec(a.shape, lambda i, _nd=nd: (0,) * _nd)

    consts = (kp["kron_adj"], kp["wa"], kp["wb"], kp["bf"],
              kp["w1"], kp["cb1"], kp["w2"], kp["cb2"])

    z_t, obj_t = pl.pallas_call(
        _glow_kernel,
        out_shape=(jax.ShapeDtypeStruct((T, C, L), jnp.float32),
                   jax.ShapeDtypeStruct((T, 1, L), jnp.float32)),
        grid=(T,),
        in_specs=[pl.BlockSpec((1, C, L), lambda i: (i, 0, 0))]
                 + [full_spec(a) for a in consts],
        out_specs=(pl.BlockSpec((1, C, L), lambda i: (i, 0, 0)),
                   pl.BlockSpec((1, 1, L), lambda i: (i, 0, 0))),
        compiler_params=pltpu.CompilerParams(dimension_semantics=("parallel",)),
    )(xt, *consts)

    # Un-pack the lane-tiled layout and finish the scalar glue in plain JAX.
    z = z_t.reshape(T, C, nt, V).transpose(0, 2, 1, 3).reshape(Np, C, V)[:N]
    objective = obj_t.reshape(T, nt, V).sum(axis=-1).reshape(Np)[:N] + kp["const_logdet"]

    # Glow.negative_log_likelihood + generative_loss
    nll = -objective / jnp.float32(np.log(2.0) * C * V)
    loss = jnp.mean(nll)
    return z, loss


def make_raw_params():
    """Deterministic synthetic parameters (no checkpoint), original (unfused) form."""
    rng = np.random.RandomState(0)
    C, V, H, K = IN_CHANNELS, JOINTS, HIDDEN, K_FLOWS

    an_bias = (0.10 * rng.randn(K, C, 1)).astype(np.float32)
    an_logs = (0.05 * rng.randn(K, C, 1)).astype(np.float32)

    # Invertible 1x1 conv weights: orthogonal * positive diagonal (well-conditioned).
    w_list, logdet_w = [], 0.0
    for _ in range(K):
        q, _ = np.linalg.qr(rng.randn(C, C))
        d = np.exp(0.05 * rng.randn(C))
        w = (q * d[None, :]).astype(np.float32)
        w_list.append(w)
        _, lad = np.linalg.slogdet(w.astype(np.float64))
        logdet_w += lad
    w_inv = np.stack(w_list).astype(np.float32)

    # 'locomotion' layout approximated as a chain skeleton + self loops, column-normalized.
    adj = np.eye(V)
    for v in range(V - 1):
        adj[v, v + 1] = 1.0
        adj[v + 1, v] = 1.0
    adj = (adj / adj.sum(axis=0, keepdims=True)).astype(np.float32)

    w1 = (rng.randn(K, H, C1) / np.sqrt(C1)).astype(np.float32)
    b1 = np.zeros((K, H, 1), np.float32)
    w2 = (0.01 * rng.randn(K, 2 * C2, H)).astype(np.float32)   # near-zero last layer (Glow-style)
    b2 = np.zeros((K, 2 * C2, 1), np.float32)

    # x-independent per-sample logdet (ActNorm + invconv parameter terms).
    const_logdet = np.float32(V * float(an_logs.sum()) + V * float(logdet_w))

    return dict(an_bias=an_bias, an_logs=an_logs, w_inv=w_inv, adj=adj,
                w1=w1, b1=b1, w2=w2, b2=b2, const_logdet=const_logdet)


def prepare_kernel_params(raw, nt):
    """Fold ActNorm into the 1x1 conv, column-split W', build kron(I_nt, adj)."""
    an_bias, an_logs, w_inv = raw["an_bias"], raw["an_logs"], raw["w_inv"]
    e = np.exp(an_logs[:, :, 0]).astype(np.float32)                    # (K, C)
    w_f = (w_inv * e[:, None, :]).astype(np.float32)                   # W' = W @ diag(e)
    b_f = np.einsum("kij,kjl->kil", w_f, an_bias).astype(np.float32)   # b' = W' @ bias
    kron_adj = np.kron(np.eye(nt, dtype=np.float32), raw["adj"]).astype(np.float32)
    j = jnp.asarray
    return dict(
        nt=nt,
        const_logdet=jnp.float32(raw["const_logdet"]),
        kron_adj=j(kron_adj),
        wa=j(w_f[:, :, :C1]), wb=j(w_f[:, :, C1:]), bf=j(b_f),
        w1=j(raw["w1"]), cb1=j(raw["b1"]), w2=j(raw["w2"]), cb2=j(raw["b2"]))


def glow_reference(x, raw):
    """Pure-JAX reference of the original (unfused) forward pass, for validation."""
    N, C, V = x.shape
    an_bias, an_logs, w_inv, adj = raw["an_bias"], raw["an_logs"], raw["w_inv"], raw["adj"]
    w1, b1, w2, b2 = raw["w1"], raw["b1"], raw["w2"], raw["b2"]
    h = x.astype(jnp.float32)
    logdet = jnp.full((N,), raw["const_logdet"], jnp.float32)
    for k in range(K_FLOWS):
        h = (h + an_bias[k][None]) * jnp.exp(an_logs[k][None])
        h = jnp.einsum("cd,ndv->ncv", w_inv[k], h)
        z1, z2 = h[:, :C1], h[:, C1:]
        g = jnp.einsum("hc,ncv->nhv", w1[k], z1)
        g = jnp.einsum("nhv,vw->nhw", g, adj) + b1[k][None]
        g = jnp.maximum(g, 0.0)
        g = jnp.einsum("oh,nhv->nov", w2[k], g)
        g = jnp.einsum("nov,vw->now", g, adj) + b2[k][None]
        shift, scale = g[:, :C2], jax.nn.sigmoid(g[:, C2:] + 2.0)
        z2 = (z2 + shift) * scale
        logdet = logdet + jnp.sum(jnp.log(scale), axis=(1, 2))
        h = jnp.concatenate([z1, z2], axis=1)
    logp = jnp.sum(-0.5 * (math.log(2.0 * math.pi) + h * h), axis=(1, 2))
    nll = -(logdet + logp) / jnp.float32(np.log(2.0) * C * V)
    return h, jnp.mean(nll)


if __name__ == "__main__":
    N = 64   # several full lane-packed batch tiles (even tile count for megacore)
    x = jax.random.normal(jax.random.PRNGKey(0), (N, IN_CHANNELS, JOINTS), jnp.float32)

    raw = make_raw_params()
    kp = prepare_kernel_params(raw, pick_samples_per_tile())

    z, loss = glow_forward(x, kp)
    jax.block_until_ready((z, loss))

    z_ref, loss_ref = glow_reference(x, raw)
    np.testing.assert_allclose(np.asarray(z), np.asarray(z_ref), rtol=1e-3, atol=1e-3)
    np.testing.assert_allclose(float(loss), float(loss_ref), rtol=1e-3, atol=1e-3)

    print("KERNEL_OK")
</pallas_src>

<mosaic_0001>
module attributes {stable_mosaic.version = 11 : i64} {
  func.func @_glow_kernel(%arg0: i32, %arg1: memref<1x8x256xf32, #tpu.memory_space<vmem>>, %arg2: memref<256x256xf32, #tpu.memory_space<vmem>>, %arg3: memref<2x8x4xf32, #tpu.memory_space<vmem>>, %arg4: memref<2x8x4xf32, #tpu.memory_space<vmem>>, %arg5: memref<2x8x1xf32, #tpu.memory_space<vmem>>, %arg6: memref<2x32x4xf32, #tpu.memory_space<vmem>>, %arg7: memref<2x32x1xf32, #tpu.memory_space<vmem>>, %arg8: memref<2x8x32xf32, #tpu.memory_space<vmem>>, %arg9: memref<2x8x1xf32, #tpu.memory_space<vmem>>, %arg10: memref<1x8x256xf32, #tpu.memory_space<vmem>>, %arg11: memref<1x1x256xf32, #tpu.memory_space<vmem>>) attributes {dimension_semantics = [#tpu.dimension_semantics<parallel>], iteration_bounds = array<i64: 4>, scalar_prefetch = 0 : i64, scratch_operands = 0 : i64, tpu.core_type = #tpu.core_type<tc>, window_params = [{transform_indices = @transform_0, window_bounds = array<i64: 1, 8, 256>}, {pipeline_mode = #tpu.pipeline_mode<synchronous>, transform_indices = @transform_1, window_bounds = array<i64: 256, 256>}, {pipeline_mode = #tpu.pipeline_mode<synchronous>, transform_indices = @transform_2, window_bounds = array<i64: 2, 8, 4>}, {pipeline_mode = #tpu.pipeline_mode<synchronous>, transform_indices = @transform_3, window_bounds = array<i64: 2, 8, 4>}, {pipeline_mode = #tpu.pipeline_mode<synchronous>, transform_indices = @transform_4, window_bounds = array<i64: 2, 8, 1>}, {pipeline_mode = #tpu.pipeline_mode<synchronous>, transform_indices = @transform_5, window_bounds = array<i64: 2, 32, 4>}, {pipeline_mode = #tpu.pipeline_mode<synchronous>, transform_indices = @transform_6, window_bounds = array<i64: 2, 32, 1>}, {pipeline_mode = #tpu.pipeline_mode<synchronous>, transform_indices = @transform_7, window_bounds = array<i64: 2, 8, 32>}, {pipeline_mode = #tpu.pipeline_mode<synchronous>, transform_indices = @transform_8, window_bounds = array<i64: 2, 8, 1>}, {transform_indices = @transform_9, window_bounds = array<i64: 1, 8, 256>}, {transform_indices = @transform_10, window_bounds = array<i64: 1, 1, 256>}]} {
    %c0 = arith.constant 0 : index
    %c0_0 = arith.constant 0 : index
    %0 = vector.load %arg2[%c0, %c0_0] : memref<256x256xf32, #tpu.memory_space<vmem>>, vector<256x256xf32>
    %c0_1 = arith.constant 0 : index
    %c0_2 = arith.constant 0 : index
    %c0_3 = arith.constant 0 : index
    %1 = vector.load %arg1[%c0_1, %c0_2, %c0_3] : memref<1x8x256xf32, #tpu.memory_space<vmem>>, vector<1x8x256xf32>
    %2 = vector.shape_cast %1 : vector<1x8x256xf32> to vector<8x256xf32>
    %3 = vector.extract_strided_slice %2 {offsets = [0, 0], sizes = [4, 256], strides = [1, 1]} : vector<8x256xf32> to vector<4x256xf32>
    %4 = vector.extract_strided_slice %2 {offsets = [4, 0], sizes = [4, 256], strides = [1, 1]} : vector<8x256xf32> to vector<4x256xf32>
    %cst = arith.constant 0.000000e+00 : f32
    %5 = vector.broadcast %cst : f32 to vector<1x256xf32>
    %c0_4 = arith.constant 0 : index
    %c0_5 = arith.constant 0 : index
    %c0_6 = arith.constant 0 : index
    %6 = vector.load %arg3[%c0_4, %c0_5, %c0_6] : memref<2x8x4xf32, #tpu.memory_space<vmem>>, vector<1x8x4xf32>
    %7 = vector.shape_cast %6 : vector<1x8x4xf32> to vector<8x4xf32>
    %cst_7 = arith.constant dense<0.000000e+00> : vector<8x256xf32>
    %8 = tpu.matmul %7, %3, %cst_7 {dimension_numbers = #tpu.dot_dimension_numbers<[1], [0], [0], [1], [0, 0, 1, 1], [], []>} : vector<8x4xf32>, vector<4x256xf32>, vector<8x256xf32> -> vector<8x256xf32>
    %c0_8 = arith.constant 0 : index
    %c0_9 = arith.constant 0 : index
    %c0_10 = arith.constant 0 : index
    %9 = vector.load %arg4[%c0_8, %c0_9, %c0_10] : memref<2x8x4xf32, #tpu.memory_space<vmem>>, vector<1x8x4xf32>
    %10 = vector.shape_cast %9 : vector<1x8x4xf32> to vector<8x4xf32>
    %cst_11 = arith.constant dense<0.000000e+00> : vector<8x256xf32>
    %11 = tpu.matmul %10, %4, %cst_11 {dimension_numbers = #tpu.dot_dimension_numbers<[1], [0], [0], [1], [0, 0, 1, 1], [], []>} : vector<8x4xf32>, vector<4x256xf32>, vector<8x256xf32> -> vector<8x256xf32>
    %12 = arith.addf %8, %11 : vector<8x256xf32>
    %c0_12 = arith.constant 0 : index
    %c0_13 = arith.constant 0 : index
    %c0_14 = arith.constant 0 : index
    %13 = vector.load %arg5[%c0_12, %c0_13, %c0_14] : memref<2x8x1xf32, #tpu.memory_space<vmem>>, vector<1x8x1xf32>
    %14 = vector.shape_cast %13 : vector<1x8x1xf32> to vector<8x1xf32>
    %15 = vector.broadcast %14 : vector<8x1xf32> to vector<8x256xf32>
    %16 = arith.addf %12, %15 : vector<8x256xf32>
    %17 = vector.extract_strided_slice %16 {offsets = [0, 0], sizes = [4, 256], strides = [1, 1]} : vector<8x256xf32> to vector<4x256xf32>
    %18 = vector.extract_strided_slice %16 {offsets = [4, 0], sizes = [4, 256], strides = [1, 1]} : vector<8x256xf32> to vector<4x256xf32>
    %c0_15 = arith.constant 0 : index
    %c0_16 = arith.constant 0 : index
    %c0_17 = arith.constant 0 : index
    %19 = vector.load %arg6[%c0_15, %c0_16, %c0_17] : memref<2x32x4xf32, #tpu.memory_space<vmem>>, vector<1x32x4xf32>
    %20 = vector.shape_cast %19 : vector<1x32x4xf32> to vector<32x4xf32>
    %cst_18 = arith.constant dense<0.000000e+00> : vector<32x256xf32>
    %21 = tpu.matmul %20, %17, %cst_18 {dimension_numbers = #tpu.dot_dimension_numbers<[1], [0], [0], [1], [0, 0, 1, 1], [], []>} : vector<32x4xf32>, vector<4x256xf32>, vector<32x256xf32> -> vector<32x256xf32>
    %cst_19 = arith.constant dense<0.000000e+00> : vector<32x256xf32>
    %22 = tpu.matmul %21, %0, %cst_19 {dimension_numbers = #tpu.dot_dimension_numbers<[1], [0], [0], [1], [0, 0, 1, 1], [], []>} : vector<32x256xf32>, vector<256x256xf32>, vector<32x256xf32> -> vector<32x256xf32>
    %c0_20 = arith.constant 0 : index
    %c0_21 = arith.constant 0 : index
    %c0_22 = arith.constant 0 : index
    %23 = vector.load %arg7[%c0_20, %c0_21, %c0_22] : memref<2x32x1xf32, #tpu.memory_space<vmem>>, vector<1x32x1xf32>
    %24 = vector.shape_cast %23 : vector<1x32x1xf32> to vector<32x1xf32>
    %25 = vector.broadcast %24 : vector<32x1xf32> to vector<32x256xf32>
    %26 = arith.addf %22, %25 : vector<32x256xf32>
    %cst_23 = arith.constant 0.000000e+00 : f32
    %27 = vector.broadcast %cst_23 : f32 to vector<32x256xf32>
    %28 = arith.maximumf %26, %27 : vector<32x256xf32>
    %c0_24 = arith.constant 0 : index
    %c0_25 = arith.constant 0 : index
    %c0_26 = arith.constant 0 : index
    %29 = vector.load %arg8[%c0_24, %c0_25, %c0_26] : memref<2x8x32xf32, #tpu.memory_space<vmem>>, vector<1x8x32xf32>
    %30 = vector.shape_cast %29 : vector<1x8x32xf32> to vector<8x32xf32>
    %cst_27 = arith.constant dense<0.000000e+00> : vector<8x256xf32>
    %31 = tpu.matmul %30, %28, %cst_27 {dimension_numbers = #tpu.dot_dimension_numbers<[1], [0], [0], [1], [0, 0, 1, 1], [], []>} : vector<8x32xf32>, vector<32x256xf32>, vector<8x256xf32> -> vector<8x256xf32>
    %cst_28 = arith.constant dense<0.000000e+00> : vector<8x256xf32>
    %32 = tpu.matmul %31, %0, %cst_28 {dimension_numbers = #tpu.dot_dimension_numbers<[1], [0], [0], [1], [0, 0, 1, 1], [], []>} : vector<8x256xf32>, vector<256x256xf32>, vector<8x256xf32> -> vector<8x256xf32>
    %c0_29 = arith.constant 0 : index
    %c0_30 = arith.constant 0 : index
    %c0_31 = arith.constant 0 : index
    %33 = vector.load %arg9[%c0_29, %c0_30, %c0_31] : memref<2x8x1xf32, #tpu.memory_space<vmem>>, vector<1x8x1xf32>
    %34 = vector.shape_cast %33 : vector<1x8x1xf32> to vector<8x1xf32>
    %35 = vector.broadcast %34 : vector<8x1xf32> to vector<8x256xf32>
    %36 = arith.addf %32, %35 : vector<8x256xf32>
    %37 = vector.extract_strided_slice %36 {offsets = [0, 0], sizes = [4, 256], strides = [1, 1]} : vector<8x256xf32> to vector<4x256xf32>
    %38 = vector.extract_strided_slice %36 {offsets = [4, 0], sizes = [4, 256], strides = [1, 1]} : vector<8x256xf32> to vector<4x256xf32>
    %cst_32 = arith.constant 2.000000e+00 : f32
    %39 = vector.broadcast %cst_32 : f32 to vector<4x256xf32>
    %40 = arith.addf %38, %39 : vector<4x256xf32>
    %41 = arith.negf %40 : vector<4x256xf32>
    %42 = math.exp %41 : vector<4x256xf32>
    %cst_33 = arith.constant 1.000000e+00 : f32
    %43 = vector.broadcast %cst_33 : f32 to vector<4x256xf32>
    %44 = arith.addf %43, %42 : vector<4x256xf32>
    %45 = arith.divf %43, %44 : vector<4x256xf32>
    %cst_34 = arith.constant 0.000000e+00 : f32
    %46 = vector.broadcast %cst_34 : f32 to vector<4x256xf32>
    %47 = arith.minimumf %40, %46 : vector<4x256xf32>
    %48 = math.absf %40 : vector<4x256xf32>
    %cst_35 = arith.constant 0.000000e+00 : f32
    %49 = vector.broadcast %cst_35 : f32 to vector<4x256xf32>
    %50 = arith.subf %49, %48 : vector<4x256xf32>
    %51 = math.exp %50 : vector<4x256xf32>
    %cst_36 = arith.constant 1.000000e+00 : f32
    %52 = vector.broadcast %cst_36 : f32 to vector<4x256xf32>
    %53 = arith.addf %52, %51 : vector<4x256xf32>
    %54 = math.log %53 : vector<4x256xf32>
    %55 = arith.subf %47, %54 : vector<4x256xf32>
    %56 = arith.addf %18, %37 : vector<4x256xf32>
    %57 = arith.mulf %56, %45 : vector<4x256xf32>
    %cst_37 = arith.constant dense<0.000000e+00> : vector<256xf32>
    %58 = vector.multi_reduction <add>, %55, %cst_37 [0] : vector<4x256xf32> to vector<256xf32>
    %59 = vector.shape_cast %58 : vector<256xf32> to vector<1x256xf32>
    %60 = arith.addf %5, %59 : vector<1x256xf32>
    %c1 = arith.constant 1 : index
    %c0_38 = arith.constant 0 : index
    %c0_39 = arith.constant 0 : index
    %61 = vector.load %arg3[%c1, %c0_38, %c0_39] : memref<2x8x4xf32, #tpu.memory_space<vmem>>, vector<1x8x4xf32>
    %62 = vector.shape_cast %61 : vector<1x8x4xf32> to vector<8x4xf32>
    %cst_40 = arith.constant dense<0.000000e+00> : vector<8x256xf32>
    %63 = tpu.matmul %62, %17, %cst_40 {dimension_numbers = #tpu.dot_dimension_numbers<[1], [0], [0], [1], [0, 0, 1, 1], [], []>} : vector<8x4xf32>, vector<4x256xf32>, vector<8x256xf32> -> vector<8x256xf32>
    %c1_41 = arith.constant 1 : index
    %c0_42 = arith.constant 0 : index
    %c0_43 = arith.constant 0 : index
    %64 = vector.load %arg4[%c1_41, %c0_42, %c0_43] : memref<2x8x4xf32, #tpu.memory_space<vmem>>, vector<1x8x4xf32>
    %65 = vector.shape_cast %64 : vector<1x8x4xf32> to vector<8x4xf32>
    %cst_44 = arith.constant dense<0.000000e+00> : vector<8x256xf32>
    %66 = tpu.matmul %65, %57, %cst_44 {dimension_numbers = #tpu.dot_dimension_numbers<[1], [0], [0], [1], [0, 0, 1, 1], [], []>} : vector<8x4xf32>, vector<4x256xf32>, vector<8x256xf32> -> vector<8x256xf32>
    %67 = arith.addf %63, %66 : vector<8x256xf32>
    %c1_45 = arith.constant 1 : index
    %c0_46 = arith.constant 0 : index
    %c0_47 = arith.constant 0 : index
    %68 = vector.load %arg5[%c1_45, %c0_46, %c0_47] : memref<2x8x1xf32, #tpu.memory_space<vmem>>, vector<1x8x1xf32>
    %69 = vector.shape_cast %68 : vector<1x8x1xf32> to vector<8x1xf32>
    %70 = vector.broadcast %69 : vector<8x1xf32> to vector<8x256xf32>
    %71 = arith.addf %67, %70 : vector<8x256xf32>
    %72 = vector.extract_strided_slice %71 {offsets = [0, 0], sizes = [4, 256], strides = [1, 1]} : vector<8x256xf32> to vector<4x256xf32>
    %73 = vector.extract_strided_slice %71 {offsets = [4, 0], sizes = [4, 256], strides = [1, 1]} : vector<8x256xf32> to vector<4x256xf32>
    %c1_48 = arith.constant 1 : index
    %c0_49 = arith.constant 0 : index
    %c0_50 = arith.constant 0 : index
    %74 = vector.load %arg6[%c1_48, %c0_49, %c0_50] : memref<2x32x4xf32, #tpu.memory_space<vmem>>, vector<1x32x4xf32>
    %75 = vector.shape_cast %74 : vector<1x32x4xf32> to vector<32x4xf32>
    %cst_51 = arith.constant dense<0.000000e+00> : vector<32x256xf32>
    %76 = tpu.matmul %75, %72, %cst_51 {dimension_numbers = #tpu.dot_dimension_numbers<[1], [0], [0], [1], [0, 0, 1, 1], [], []>} : vector<32x4xf32>, vector<4x256xf32>, vector<32x256xf32> -> vector<32x256xf32>
    %cst_52 = arith.constant dense<0.000000e+00> : vector<32x256xf32>
    %77 = tpu.matmul %76, %0, %cst_52 {dimension_numbers = #tpu.dot_dimension_numbers<[1], [0], [0], [1], [0, 0, 1, 1], [], []>} : vector<32x256xf32>, vector<256x256xf32>, vector<32x256xf32> -> vector<32x256xf32>
    %c1_53 = arith.constant 1 : index
    %c0_54 = arith.constant 0 : index
    %c0_55 = arith.constant 0 : index
    %78 = vector.load %arg7[%c1_53, %c0_54, %c0_55] : memref<2x32x1xf32, #tpu.memory_space<vmem>>, vector<1x32x1xf32>
    %79 = vector.shape_cast %78 : vector<1x32x1xf32> to vector<32x1xf32>
    %80 = vector.broadcast %79 : vector<32x1xf32> to vector<32x256xf32>
    %81 = arith.addf %77, %80 : vector<32x256xf32>
    %cst_56 = arith.constant 0.000000e+00 : f32
    %82 = vector.broadcast %cst_56 : f32 to vector<32x256xf32>
    %83 = arith.maximumf %81, %82 : vector<32x256xf32>
    %c1_57 = arith.constant 1 : index
    %c0_58 = arith.constant 0 : index
    %c0_59 = arith.constant 0 : index
    %84 = vector.load %arg8[%c1_57, %c0_58, %c0_59] : memref<2x8x32xf32, #tpu.memory_space<vmem>>, vector<1x8x32xf32>
    %85 = vector.shape_cast %84 : vector<1x8x32xf32> to vector<8x32xf32>
    %cst_60 = arith.constant dense<0.000000e+00> : vector<8x256xf32>
    %86 = tpu.matmul %85, %83, %cst_60 {dimension_numbers = #tpu.dot_dimension_numbers<[1], [0], [0], [1], [0, 0, 1, 1], [], []>} : vector<8x32xf32>, vector<32x256xf32>, vector<8x256xf32> -> vector<8x256xf32>
    %cst_61 = arith.constant dense<0.000000e+00> : vector<8x256xf32>
    %87 = tpu.matmul %86, %0, %cst_61 {dimension_numbers = #tpu.dot_dimension_numbers<[1], [0], [0], [1], [0, 0, 1, 1], [], []>} : vector<8x256xf32>, vector<256x256xf32>, vector<8x256xf32> -> vector<8x256xf32>
    %c1_62 = arith.constant 1 : index
    %c0_63 = arith.constant 0 : index
    %c0_64 = arith.constant 0 : index
    %88 = vector.load %arg9[%c1_62, %c0_63, %c0_64] : memref<2x8x1xf32, #tpu.memory_space<vmem>>, vector<1x8x1xf32>
    %89 = vector.shape_cast %88 : vector<1x8x1xf32> to vector<8x1xf32>
    %90 = vector.broadcast %89 : vector<8x1xf32> to vector<8x256xf32>
    %91 = arith.addf %87, %90 : vector<8x256xf32>
    %92 = vector.extract_strided_slice %91 {offsets = [0, 0], sizes = [4, 256], strides = [1, 1]} : vector<8x256xf32> to vector<4x256xf32>
    %93 = vector.extract_strided_slice %91 {offsets = [4, 0], sizes = [4, 256], strides = [1, 1]} : vector<8x256xf32> to vector<4x256xf32>
    %cst_65 = arith.constant 2.000000e+00 : f32
    %94 = vector.broadcast %cst_65 : f32 to vector<4x256xf32>
    %95 = arith.addf %93, %94 : vector<4x256xf32>
    %96 = arith.negf %95 : vector<4x256xf32>
    %97 = math.exp %96 : vector<4x256xf32>
    %cst_66 = arith.constant 1.000000e+00 : f32
    %98 = vector.broadcast %cst_66 : f32 to vector<4x256xf32>
    %99 = arith.addf %98, %97 : vector<4x256xf32>
    %100 = arith.divf %98, %99 : vector<4x256xf32>
    %cst_67 = arith.constant 0.000000e+00 : f32
    %101 = vector.broadcast %cst_67 : f32 to vector<4x256xf32>
    %102 = arith.minimumf %95, %101 : vector<4x256xf32>
    %103 = math.absf %95 : vector<4x256xf32>
    %cst_68 = arith.constant 0.000000e+00 : f32
    %104 = vector.broadcast %cst_68 : f32 to vector<4x256xf32>
    %105 = arith.subf %104, %103 : vector<4x256xf32>
    %106 = math.exp %105 : vector<4x256xf32>
    %cst_69 = arith.constant 1.000000e+00 : f32
    %107 = vector.broadcast %cst_69 : f32 to vector<4x256xf32>
    %108 = arith.addf %107, %106 : vector<4x256xf32>
    %109 = math.log %108 : vector<4x256xf32>
    %110 = arith.subf %102, %109 : vector<4x256xf32>
    %111 = arith.addf %73, %92 : vector<4x256xf32>
    %112 = arith.mulf %111, %100 : vector<4x256xf32>
    %cst_70 = arith.constant dense<0.000000e+00> : vector<256xf32>
    %113 = vector.multi_reduction <add>, %110, %cst_70 [0] : vector<4x256xf32> to vector<256xf32>
    %114 = vector.shape_cast %113 : vector<256xf32> to vector<1x256xf32>
    %115 = arith.addf %60, %114 : vector<1x256xf32>
    %116 = arith.mulf %72, %72 : vector<4x256xf32>
    %cst_71 = arith.constant dense<0.000000e+00> : vector<256xf32>
    %117 = vector.multi_reduction <add>, %116, %cst_71 [0] : vector<4x256xf32> to vector<256xf32>
    %118 = vector.shape_cast %117 : vector<256xf32> to vector<1x256xf32>
    %119 = arith.mulf %112, %112 : vector<4x256xf32>
    %cst_72 = arith.constant dense<0.000000e+00> : vector<256xf32>
    %120 = vector.multi_reduction <add>, %119, %cst_72 [0] : vector<4x256xf32> to vector<256xf32>
    %121 = vector.shape_cast %120 : vector<256xf32> to vector<1x256xf32>
    %122 = arith.addf %118, %121 : vector<1x256xf32>
    %cst_73 = arith.constant 8.000000e+00 : f32
    %cst_74 = arith.constant 1.83787704 : f32
    %123 = arith.mulf %cst_73, %cst_74 : f32
    %124 = vector.broadcast %123 : f32 to vector<1x256xf32>
    %125 = arith.addf %124, %122 : vector<1x256xf32>
    %cst_75 = arith.constant 5.000000e-01 : f32
    %126 = vector.broadcast %cst_75 : f32 to vector<1x256xf32>
    %127 = arith.mulf %126, %125 : vector<1x256xf32>
    %128 = arith.subf %115, %127 : vector<1x256xf32>
    %129 = tpu.concatenate %72, %112 in 0 : vector<4x256xf32>, vector<4x256xf32> -> vector<8x256xf32>
    %c0_76 = arith.constant 0 : index
    %c0_77 = arith.constant 0 : index
    %c0_78 = arith.constant 0 : index
    %130 = vector.load %arg10[%c0_76, %c0_77, %c0_78] : memref<1x8x256xf32, #tpu.memory_space<vmem>>, vector<1x8x256xf32>
    %131 = vector.shape_cast %130 : vector<1x8x256xf32> to vector<8x256xf32>
    %132 = vector.shape_cast %129 : vector<8x256xf32> to vector<1x8x256xf32>
    tpu.vector_store %arg10[%c0_76, %c0_77, %c0_78], %132 {strides = array<i32>} : memref<1x8x256xf32, #tpu.memory_space<vmem>>, vector<1x8x256xf32>,
    %133 = vector.shape_cast %128 : vector<1x256xf32> to vector<1x1x256xf32>
    %c0_79 = arith.constant 0 : index
    %c0_80 = arith.constant 0 : index
    %c0_81 = arith.constant 0 : index
    %134 = vector.load %arg11[%c0_79, %c0_80, %c0_81] : memref<1x1x256xf32, #tpu.memory_space<vmem>>, vector<1x1x256xf32>
    tpu.vector_store %arg11[%c0_79, %c0_80, %c0_81], %133 {strides = array<i32>} : memref<1x1x256xf32, #tpu.memory_space<vmem>>, vector<1x1x256xf32>,
    return
  }
  func.func @transform_0(%arg0: i32) -> (i32, i32, i32) {
    %c0_i32 = arith.constant 0 : i32
    %c0_i32_0 = arith.constant 0 : i32
    %c0_i32_1 = arith.constant 0 : i32
    return %arg0, %c0_i32, %c0_i32_0 : i32, i32, i32
  }
  func.func @transform_1(%arg0: i32) -> (i32, i32) {
    %c0_i32 = arith.constant 0 : i32
    %c0_i32_0 = arith.constant 0 : i32
    %c0_i32_1 = arith.constant 0 : i32
    return %c0_i32, %c0_i32_0 : i32, i32
  }
  func.func @transform_2(%arg0: i32) -> (i32, i32, i32) {
    %c0_i32 = arith.constant 0 : i32
    %c0_i32_0 = arith.constant 0 : i32
    %c0_i32_1 = arith.constant 0 : i32
    %c0_i32_2 = arith.constant 0 : i32
    return %c0_i32, %c0_i32_0, %c0_i32_1 : i32, i32, i32
  }
  func.func @transform_3(%arg0: i32) -> (i32, i32, i32) {
    %c0_i32 = arith.constant 0 : i32
    %c0_i32_0 = arith.constant 0 : i32
    %c0_i32_1 = arith.constant 0 : i32
    %c0_i32_2 = arith.constant 0 : i32
    return %c0_i32, %c0_i32_0, %c0_i32_1 : i32, i32, i32
  }
  func.func @transform_4(%arg0: i32) -> (i32, i32, i32) {
    %c0_i32 = arith.constant 0 : i32
    %c0_i32_0 = arith.constant 0 : i32
    %c0_i32_1 = arith.constant 0 : i32
    %c0_i32_2 = arith.constant 0 : i32
    return %c0_i32, %c0_i32_0, %c0_i32_1 : i32, i32, i32
  }
  func.func @transform_5(%arg0: i32) -> (i32, i32, i32) {
    %c0_i32 = arith.constant 0 : i32
    %c0_i32_0 = arith.constant 0 : i32
    %c0_i32_1 = arith.constant 0 : i32
    %c0_i32_2 = arith.constant 0 : i32
    return %c0_i32, %c0_i32_0, %c0_i32_1 : i32, i32, i32
  }
  func.func @transform_6(%arg0: i32) -> (i32, i32, i32) {
    %c0_i32 = arith.constant 0 : i32
    %c0_i32_0 = arith.constant 0 : i32
    %c0_i32_1 = arith.constant 0 : i32
    %c0_i32_2 = arith.constant 0 : i32
    return %c0_i32, %c0_i32_0, %c0_i32_1 : i32, i32, i32
  }
  func.func @transform_7(%arg0: i32) -> (i32, i32, i32) {
    %c0_i32 = arith.constant 0 : i32
    %c0_i32_0 = arith.constant 0 : i32
    %c0_i32_1 = arith.constant 0 : i32
    %c0_i32_2 = arith.constant 0 : i32
    return %c0_i32, %c0_i32_0, %c0_i32_1 : i32, i32, i32
  }
  func.func @transform_8(%arg0: i32) -> (i32, i32, i32) {
    %c0_i32 = arith.constant 0 : i32
    %c0_i32_0 = arith.constant 0 : i32
    %c0_i32_1 = arith.constant 0 : i32
    %c0_i32_2 = arith.constant 0 : i32
    return %c0_i32, %c0_i32_0, %c0_i32_1 : i32, i32, i32
  }
  func.func @transform_9(%arg0: i32) -> (i32, i32, i32) {
    %c0_i32 = arith.constant 0 : i32
    %c0_i32_0 = arith.constant 0 : i32
    %c0_i32_1 = arith.constant 0 : i32
    return %arg0, %c0_i32, %c0_i32_0 : i32, i32, i32
  }
  func.func @transform_10(%arg0: i32) -> (i32, i32, i32) {
    %c0_i32 = arith.constant 0 : i32
    %c0_i32_0 = arith.constant 0 : i32
    %c0_i32_1 = arith.constant 0 : i32
    return %arg0, %c0_i32, %c0_i32_0 : i32, i32, i32
  }
}

</mosaic_0001>

<bundles_post_ra>
// kernel: tpu_custom_call.1
= control target key start
LH: loop header
LB: loop body
LE: loop exit
PB: predicated region body
PF: predicated region fallthrough
CT: control target
= control target key end

     0   :  { %s3061_s0 = inlined_call_operand.vmem [shape: f32[4,8,256], index: 0, kind: input, shape index: {}]   ;;  %s3062_s1 = inlined_call_operand.hbm [shape: f32[256,256], index: 1, kind: input, shape index: {}]   ;;  %s3063_s2 = inlined_call_operand.vmem [shape: f32[2,8,4], index: 2, kind: input, shape index: {}]   ;;  %s3064_s3 = inlined_call_operand.vmem [shape: f32[2,8,4], index: 3, kind: input, shape index: {}]   ;;  %s3065_s4 = inlined_call_operand.vmem [shape: f32[2,8,1], index: 4, kind: input, shape index: {}]   ;;  %s3066_s5 = inlined_call_operand.vmem [shape: f32[2,32,4], index: 5, kind: input, shape index: {}]   ;;  %s3067_s6 = inlined_call_operand.vmem [shape: f32[2,32,1], index: 6, kind: input, shape index: {}]   ;;  %s3068_s7 = inlined_call_operand.vmem [shape: f32[2,8,32], index: 7, kind: input, shape index: {}]   ;;  %s3069_s8 = inlined_call_operand.vmem [shape: f32[2,8,1], index: 8, kind: input, shape index: {}]   ;;  %s3070_s9 = inlined_call_operand.hbm [shape: f32[4,8,256], index: 9, kind: output, shape index: {0}]   ;;  %s3071_s10 = inlined_call_operand.hbm [shape: f32[4,1,256], index: 10, kind: output, shape index: {1}]  }
   0x1   :  { %3075 = sst [smem:[#allocation11_spill]] %s3061_s0 }
   0x2   :  { %16 = vsyncpa [#allocation3], 0 }
   0x3   :  { %17 = vsyncpa [#allocation4], 0 }
   0x4   :  { %19 = vsyncpa [#allocation4 + $0x1], 0 }
   0x5   :  { %20 = vsyncpa [#allocation7], 0 }
   0x6   :  { %22 = vsyncpa [#allocation7 + $0x1], 0  ;;  %s2527_s13 = smov 0   ;;  %s2529_s14 = smov 0  }
   0x7   :  { %s2531_s15 = smov 0   ;;  %s2533_s16 = smov 0  }
   0x8 LB: > { %s2548_s17 = sadd.s32 4294967295, %s2462_s16   ;;  %s1902_s18 = sadd.s32 4294967294, %s2462_s16   ;;  %s2462_s16 = sphi %s2533_s16, %s3089_s16   ;;  %s2458_s15 = sphi %s2531_s15, %s3088_s15   ;;  %s2454_s14 = sphi %s2529_s14, %s3087_s14   ;;  %s2450_s13 = sphi %s2527_s13, %s3086_s13  }
   0x9   : > { %s2552_s19 = sadd.s32 1, %s2462_s16   ;;  %s229_s20 = sadd.s32 1, %s2458_s15 }
   0xa   : > { %s226_s21 = ssub.s32 %s2462_s16, %s2552_s19  ;;  %p239_p0 = scmp.ne.s32.totalorder %s2458_s15, %s2454_s14 }
   0xb   : > { %p227_p1 = scmp.eq.s32.totalorder %s226_s21, 0  ;;  %p240_p2 = scmp.eq.s32.totalorder %s2548_s17, 3 }
   0xc   : > { %p245_p3 = scmp.ne.s32.totalorder %s2454_s14, %s2450_s13  ;;  %p246_p4 = scmp.eq.s32.totalorder %s1902_s18, 3 }
   0xd   : > { %s2563_s22 = scalar_select %p227_p1, %s2458_s15, %s229_s20  }
   0xe   : > { %p2565_p5 = por %p240_p2, %p239_p0  ;;  %p2569_p6 = por %p246_p4, %p245_p3 }
   0xf   : > { %p1903_p7 = scmp.ge.s32.totalorder %s2462_s16, 1  ;;  %p279_p8 = scmp.lt.s32.totalorder %s2462_s16, 5 }
  0x10   : > { %s3076_s23 = scalar_select %p2565_p5, 1, 0 }
  0x11   : > { %s3077_s24 = scalar_select %p2569_p6, 1, 0 }
  0x12   : > { %p3072_p9 = scmp.eq.s32.totalorder %s2548_s17, 0  ;;  %p2576_p10 = pnand %p1903_p7, %p279_p8 }
  0x13   : > { %s2464_s26 = smov [#allocation2]   ;;  %s2336_s11 = scalar_lea.hbm %s3062_s1, 8192 }
  0x14   : > { %s3078_s25 = scalar_select %p2576_p10, 1, 0 }
  0x15   : > { %s291_s27 = sshll.u32 %s2464_s26, 4  ;;  %p2250_p11 = pneg %p2576_p10  ;;  %s292_s27 = int_to_ptr.vmem [resolvable:$true] %s291_s27 }
  0x16   : > { %p2337_p13 = scmp.ne.s32.totalorder %s3062_s1, %s2336_s11  ;;  %p2343_p3 = scmp.lt.u32.totalorder %s2336_s11, %s3062_s1 }
  0x17   : > { %p2584_p12 = pnand %p3072_p9, %p2250_p11 }
  0x19   : > { %p2338_p0 = pneg %p2584_p12 }
  0x1b   : > { %p2339_p1 = pnand %p2338_p0, %p2337_p13 }
  0x1d   : > { %p2340_p2 = pneg %p2339_p1 }
  0x1f   : > { %p2345_p4 = pnand %p2343_p3, %p2340_p2 }
  0x21   : > { %2348 = shalt.err (!%p2345_p4)
}
  0x22   : > { %s2349_s26 = scalar_lea.vmem %s292_s27, 8192  ;;  %p2357_p9 = scmp.lt.s32.totalorder %s292_s27, %s292_s27 }
  0x23   : > { %p2350_p7 = scmp.ne.s32.totalorder %s292_s27, %s2349_s26  ;;  %p2358_p6 = scmp.lt.s32.totalorder %s2349_s26, %s2349_s26 }
  0x25   : > { %p2352_p8 = pnand %p2350_p7, %p2338_p0  ;;  %p2359_p5 = por %p2358_p6, %p2357_p9 }
  0x27   : > { %p2353_p11 = pneg %p2352_p8 }
  0x29   : > { %p2360_p10 = pnand %p2359_p5, %p2353_p11 }
  0x2b   : > { %2363 = shalt.err (!%p2360_p10)
}
  0x2c   : > { %s2465_s29 = smov 256   ;;  %s2466_s30 = smov 16  }
  0x2d   : > { %2253 = dma.hbm_to_vmem [thread:$0]  (!%p2584_p12), %s3062_s1, 8192, %s292_s27, [#allocation3], %s2465_s29, %s2465_s29, %s2466_s30  }
  0x2e   : > { %p3080_p13 = scmp.ne.s32.totalorder %s3078_s25, 0 }
  0x2f   : > { %p3081_p1 = scmp.eq.s32.totalorder (!%p3080_p13), %s2548_s17, 0 }
  0x30   : > { %336 = sbr.rel (%p3080_p13) target bundleno = 2394 (0x95a), region = 56 }
  0x37   : > { %2437 = dma.done.wait (%p3081_p1), [#allocation3], 8192   ;;  %p3082_p0 = pmov %p3081_p1 }
  0x38   : > { %p379_p5 = scmp.lt.s32.totalorder %s2548_s17, 3  ;;  %v2467_v0 = vmov 0.0   ;;  %v2468_v1 = vmov 0   ;;  %s3083_s0 = sld [smem:[#allocation11_spill]]  ;;  %vm460_vm0 = vcmask 1043456   ;;  %v614_v6 = vld [vmem:[%s3065_s4] sm:$0xff] }
  0x39   : > { %2439 = vsyncadd (%p3082_p0), [#allocation3], 4294959104  ;;  %529 = vmatprep.mubr.f32.mxu0 %v2467_v0  ;;  %708 = vmatprep.mubr.f32.mxu1 %v2467_v0  ;;  %v451_v7 = vld [vmem:[%s3064_s3] sm:$0xff]  ;;  %vm456_vm1 = vcmask 31744   ;;  %v736_v9 = vld [vmem:[%s3067_s6 + $0x18] sm:$0xff]  ;;  %vm855_vm2 = vcmask 261120  }
  0x3a   : > { %s380_s28 = scalar_select %p379_p5, %s2548_s17, 3  ;;  %2302 = vset.pattern.permute.xlu0 %v2468_v1  ;;  %2303 = vset.pattern.permute.xlu1 %v2468_v1  ;;  %v733_v8 = vld [vmem:[%s3067_s6] sm:$0xff]  ;;  %v1935_v11 = vld [vmem:[%s3065_s4 + $0x8] sm:$0xff]  ;;  %v1949_v13 = vld [vmem:[%s3067_s6 + $0x38] sm:$0xff] }
  0x3b   : > { %617 = vperm.xlu0 %2302, %v614_v6   ;;  %v450_v10 = vld [vmem:[%s3063_s2] sm:$0xff]  ;;  %v1947_v12 = vld [vmem:[%s3067_s6 + $0x28] sm:$0xff]  ;;  %v387_v15 = vld [vmem:[#allocation2 + $0x18] sm:$0xff]  ;;  %s2964_s27 = sand.u32 1, %s2454_s14   ;;  %p3084_p9 = scmp.ne.s32.totalorder %s3076_s23, 0 }
  0x3c   : > { %s1963_s25 = sshll.u32 %s380_s28, 4  ;;  %v385_v14 = vld [vmem:[#allocation2 + $0x8] sm:$0xff]  ;;  %v384_v17 = vld [vmem:[#allocation2] sm:$0xff]  ;;  %v386_v18 = vld [vmem:[#allocation2 + $0x10] sm:$0xff]  ;;  %s1908_s11 = sshll.u32 %s2964_s27, 4 }
  0x3d   : > { %v389_v21 = vld [vmem:[#allocation2 + $0x28] sm:$0xff]  ;;  %v391_v22 = vld [vmem:[#allocation2 + $0x38] sm:$0xff]  ;;  %v2651_v24 = vpack.c.bf16 %v387_v15, %v385_v14  ;;  %v622_v26 = vld [vmem:[%s3066_s5] sm:$0xff]  ;;  %v2658_v27 = vpack.c.bf16 %v386_v18, %v384_v17  ;;  %s371_s21 = scalar_lea.vmem [#allocation5], %s1908_s11  ;;  %s1766_s18 = scalar_lea.sflag [#allocation4], %s2964_s27 }
  0x3e   : > { %s383_s20 = scalar_lea.vmem %s3083_s0, %s1963_s25  ;;  %v2662_v28 = vpack.c.bf16 %v391_v22, %v389_v21  ;;  %v388_v29 = vld [vmem:[#allocation2 + $0x20] sm:$0xff]  ;;  %v390_v30 = vld [vmem:[#allocation2 + $0x30] sm:$0xff]  ;;  %v393_v31 = vld [vmem:[#allocation2 + $0x48] sm:$0xff]  ;;  %s1785_s26 = sshll.u32 %s371_s21, 4  ;;  %s2981_s26 = int_to_ptr.vmem [resolvable:$true] %s1785_s26 }
  0x3f   : > { %v448_v2 = vld [vmem:[%s383_s20] sm:$0xff]  ;;  %v449_v3 = vld [vmem:[%s383_s20 + $0x8] sm:$0xff]  ;;  %739 = vperm.xlu0 %2302, %v733_v8   ;;  %v395_v32 = vld [vmem:[#allocation2 + $0x58] sm:$0xff]  ;;  %v2673_v34 = vpack.c.bf16 %v390_v30, %v388_v29  ;;  %s1964_s20 = sshll.u32 %s2548_s17, 8  ;;  %s2364_s28 = scalar_lea.vmem %s2981_s26, 256 }
  0x40   : > { %v455_v4 = vrot.slane %v449_v3, 4  ;;  %v454_v5 = vrot.slane %v448_v2, 4  ;;  %v623_v33 = vld [vmem:[%s3066_s5 + $0x8] sm:$0xff]  ;;  %v2676_v35 = vpack.c.bf16 %v395_v32, %v393_v31  ;;  %v392_v36 = vld [vmem:[#allocation2 + $0x40] sm:$0xff]  ;;  %v394_v37 = vld [vmem:[#allocation2 + $0x50] sm:$0xff]  ;;  %s2979_s12 = scalar_lea.hbm %s3070_s9, %s1964_s20  ;;  %p2365_p6 = scmp.ne.s32.totalorder %s2981_s26, %s2364_s28 }
  0x41   : > { %v397_v38 = vld [vmem:[#allocation2 + $0x68] sm:$0xff]  ;;  %v399_v39 = vld [vmem:[#allocation2 + $0x78] sm:$0xff]  ;;  %v624_v40 = vld [vmem:[%s3066_s5 + $0x10] sm:$0xff]  ;;  %v2684_v41 = vpack.c.bf16 %v394_v37, %v392_v36  ;;  %s2469_s25 = smov [#allocation5]  }
  0x42   : > { %1912 = vmatprep.subr.msk.mxu0 %vm460_vm0, %v455_v4  ;;  %v2687_v42 = vpack.c.bf16 %v399_v39, %v397_v38  ;;  %v396_v43 = vld [vmem:[#allocation2 + $0x60] sm:$0xff]  ;;  %v398_v44 = vld [vmem:[#allocation2 + $0x70] sm:$0xff]  ;;  %v401_v45 = vld [vmem:[#allocation2 + $0x88] sm:$0xff]  ;;  %p2366_p10 = pnand %p2365_p6, %p3084_p9  ;;  %s2368_s11 = sshll.u32 %s2469_s25, 4  ;;  %s2369_s11 = int_to_ptr.vmem [resolvable:$false] %s2368_s11 }
  0x43   : > { %1913 = vmatpush1.msk.msra.mxu0 %vm460_vm0, %v454_v5  ;;  %754 = vperm.xlu0 %2302, %v736_v9   ;;  %v403_v46 = vld [vmem:[#allocation2 + $0x98] sm:$0xff]  ;;  %v2695_v48 = vpack.c.bf16 %v398_v44, %v396_v43  ;;  %v400_v50 = vld [vmem:[#allocation2 + $0x80] sm:$0xff]  ;;  %v402_v51 = vld [vmem:[#allocation2 + $0x90] sm:$0xff]  ;;  %s2370_s20 = scalar_lea.vmem %s2369_s11, 512  ;;  %p2371_p2 = scmp.lt.s32.totalorder %s2981_s26, %s2369_s11 }
  0x44   : > { %1914 = vmatmul.mubr.msk.f32.vlgmr.msra.gmra.mrb[0].mxu0 %vm456_vm1, %v451_v7  ;;  %1915 = vmatprep.subr.msk.mxu0 %vm460_vm0, %v449_v3  ;;  %v625_v47 = vld [vmem:[%s3066_s5 + $0x18] sm:$0xff]  ;;  %v2698_v49 = vpack.c.bf16 %v403_v46, %v401_v45  ;;  %v405_v52 = vld [vmem:[#allocation2 + $0xa8] sm:$0xff]  ;;  %v2702_v54 = vpack.c.bf16 %v402_v51, %v400_v50  ;;  %v404_v56 = vld [vmem:[#allocation2 + $0xa0] sm:$0xff]  ;;  %p2367_p12 = pneg %p2366_p10  ;;  %p2372_p3 = scmp.lt.s32.totalorder %s2370_s20, %s2364_s28 }
  0x45   : > { %1916 = vmatpush1.msk.msra.mxu0 %vm460_vm0, %v448_v2  ;;  %607 = vmatprep.mubr.f32.mxu0 %v2467_v0  ;;  %v407_v53 = vld [vmem:[#allocation2 + $0xb8] sm:$0xff]  ;;  %v406_v57 = vld [vmem:[#allocation2 + $0xb0] sm:$0xff]  ;;  %v409_v58 = vld [vmem:[#allocation2 + $0xc8] sm:$0xff] }
  0x46   : > { %v2705_v55 = vpack.c.bf16 %v407_v53, %v405_v52  ;;  %v411_v59 = vld [vmem:[#allocation2 + $0xd8] sm:$0xff]  ;;  %v2708_v60 = vpack.c.bf16 %v406_v57, %v404_v56  ;;  %v408_v62 = vld [vmem:[#allocation2 + $0xc0] sm:$0xff]  ;;  %v410_v63 = vld [vmem:[#allocation2 + $0xd0] sm:$0xff]  ;;  %p2373_p4 = por %p2372_p3, %p2371_p2 }
  0x47   : > { %1235 = vperm.xlu0 %2302, %v1935_v11   ;;  %v2711_v61 = vpack.c.bf16 %v411_v59, %v409_v58  ;;  %v413_v1 = vld [vmem:[#allocation2 + $0xe8] sm:$0xff]  ;;  %v415_v2 = vld [vmem:[#allocation2 + $0xf8] sm:$0xff]  ;;  %v2714_v3 = vpack.c.bf16 %v410_v63, %v408_v62  ;;  %v412_v5 = vld [vmem:[#allocation2 + $0xe0] sm:$0xff] }
  0x48   : > { %v2717_v4 = vpack.c.bf16 %v415_v2, %v413_v1  ;;  %v414_v6 = vld [vmem:[#allocation2 + $0xf0] sm:$0xff]  ;;  %v417_v7 = vld [vmem:[#allocation2 + $0x108] sm:$0xff]  ;;  %v419_v8 = vld [vmem:[#allocation2 + $0x118] sm:$0xff]  ;;  %p2374_p7 = pnand %p2373_p4, %p2367_p12 }
  0x49   : > { %v2720_v9 = vpack.c.bf16 %v414_v6, %v412_v5  ;;  %v416_v11 = vld [vmem:[#allocation2 + $0x100] sm:$0xff]  ;;  %v423_v14 = vld [vmem:[#allocation2 + $0x138] sm:$0xff]  ;;  %v422_v18 = vld [vmem:[#allocation2 + $0x130] sm:$0xff] }
  0x4a   : > { %v420_v17 = vld [vmem:[#allocation2 + $0x120] sm:$0xff]  ;;  %v426_v29 = vld [vmem:[#allocation2 + $0x150] sm:$0xff]  ;;  %v429_v30 = vld [vmem:[#allocation2 + $0x168] sm:$0xff] }
  0x4b   : > { %1364 = vperm.xlu0 %2302, %v1947_v12   ;;  %v418_v12 = vld [vmem:[#allocation2 + $0x110] sm:$0xff]  ;;  %v2732_v21 = vpack.c.bf16 %v422_v18, %v420_v17  ;;  %v431_v31 = vld [vmem:[#allocation2 + $0x178] sm:$0xff]  ;;  %v428_v36 = vld [vmem:[#allocation2 + $0x160] sm:$0xff] }
  0x4c   : > { %1917 = vmatmul.mubr.msk.f32.vlgmr.msra.gmra.mrb[0].mxu0 %vm456_vm1, %v450_v10  ;;  %v2723_v10 = vpack.c.bf16 %v419_v8, %v417_v7  ;;  %v2726_v15 = vpack.c.bf16 %v418_v12, %v416_v11  ;;  %v430_v37 = vld [vmem:[#allocation2 + $0x170] sm:$0xff]  ;;  %v433_v38 = vld [vmem:[#allocation2 + $0x188] sm:$0xff]  ;;  %v435_v39 = vld [vmem:[#allocation2 + $0x198] sm:$0xff] }
  0x4d   : > { %923 = vmatprep.mubr.f32.mxu0 %v2467_v0  ;;  %v2747_v43 = vpack.c.bf16 %v435_v39, %v433_v38  ;;  %v432_v44 = vld [vmem:[#allocation2 + $0x180] sm:$0xff]  ;;  %v434_v45 = vld [vmem:[#allocation2 + $0x190] sm:$0xff]  ;;  %v437_v46 = vld [vmem:[#allocation2 + $0x1a8] sm:$0xff] }
  0x4e   : > { %v2750_v50 = vpack.c.bf16 %v434_v45, %v432_v44  ;;  %v436_v52 = vld [vmem:[#allocation2 + $0x1a0] sm:$0xff]  ;;  %v438_v53 = vld [vmem:[#allocation2 + $0x1b0] sm:$0xff]  ;;  %v441_v56 = vld [vmem:[#allocation2 + $0x1c8] sm:$0xff] }
  0x4f   : > { %1374 = vperm.xlu0 %2302, %v1949_v13   ;;  %v421_v13 = vld [vmem:[#allocation2 + $0x128] sm:$0xff]  ;;  %v443_v57 = vld [vmem:[#allocation2 + $0x1d8] sm:$0xff]  ;;  %v2756_v58 = vpack.c.bf16 %v438_v53, %v436_v52  ;;  %v440_v62 = vld [vmem:[#allocation2 + $0x1c0] sm:$0xff] }
  0x50   : > { %v2759_v59 = vpack.c.bf16 %v443_v57, %v441_v56  ;;  %v442_v63 = vld [vmem:[#allocation2 + $0x1d0] sm:$0xff]  ;;  %v445_v1 = vld [vmem:[#allocation2 + $0x1e8] sm:$0xff]  ;;  %v447_v2 = vld [vmem:[#allocation2 + $0x1f8] sm:$0xff] }
  0x51   : > { %v2762_v5 = vpack.c.bf16 %v442_v63, %v440_v62  ;;  %v2765_v6 = vpack.c.bf16 %v447_v2, %v445_v1  ;;  %v444_v7 = vld [vmem:[#allocation2 + $0x1e0] sm:$0xff]  ;;  %v446_v8 = vld [vmem:[#allocation2 + $0x1f0] sm:$0xff]  ;;  %v734_v12 = vld [vmem:[%s3067_s6 + $0x8] sm:$0xff] }
  0x52   : > { %v2769_v11 = vpack.c.bf16 %v446_v8, %v444_v7  ;;  %744 = vperm.xlu1 %2303, %v734_v12   ;;  %v1946_v17 = vld [vmem:[%s3067_s6 + $0x20] sm:$0xff]  ;;  %v1948_v18 = vld [vmem:[%s3067_s6 + $0x30] sm:$0xff] }
  0xba   : > { %v618_v19 = vpop.permute.xlu0 %617 }
  0xbe   : > { %v740_v45 = vpop.permute.xlu0 %739 }
 0x11f   : > { %v609_v16 = vpop.f32.mrb[0].mxu0 }
 0x120   : > { %v611_v20 = vpop.f32.mrb[1].mxu0  ;;  %v2653_v25 = vadd.f32 %v618_v19, %v609_v16  ;;  %v2729_v16 = vpack.c.bf16 %v423_v14, %v421_v13  ;;  %v735_v13 = vld [vmem:[%s3067_s6 + $0x10] sm:$0xff]  ;;  %v930_v14 = vld [vmem:[%s3069_s8] sm:$0xff] }
 0x121   : > { %v2649_v23 = vadd.f32 %v618_v19, %v611_v20  ;;  %v425_v19 = vld [vmem:[#allocation2 + $0x148] sm:$0xff]  ;;  %v427_v20 = vld [vmem:[#allocation2 + $0x158] sm:$0xff]  ;;  %749 = vperm.xlu1 %2303, %v735_v13  }
 0x122   : > { %v2735_v22 = vpack.c.bf16 %v427_v20, %v425_v19  ;;  %v1952_v19 = vld [vmem:[%s3069_s8 + $0x8] sm:$0xff] }
 0x123   : > { %1918 = vmatprep.subr.msk.mxu1 %vm460_vm0, %v2649_v23 }
 0x124   : > { %1919 = vmatpush1.msk.msra.mxu1 %vm460_vm0, %v2653_v25 }
 0x125   : > { %1920 = vmatmul.mubr.msk.f32.vlgmr.msra.gmra.mrb[0].mxu1 %vm456_vm1, %v622_v26  ;;  %1967 = vmatprep.subr.bf16.mxu1 %v2651_v24  ;;  %v424_v26 = vld [vmem:[#allocation2 + $0x140] sm:$0xff] }
 0x126   : > { %714 = vmatprep.mubr.f32.mxu1 %v2467_v0  ;;  %1969 = vmatpush1.bf16.msra.mxu1 %v2658_v27  ;;  %v2738_v32 = vpack.c.bf16 %v426_v29, %v424_v26 }
 0x127   : > { %1971 = vmatprep.subr.bf16.mxu1 %v2662_v28  ;;  %933 = vperm.xlu1 %2303, %v930_v14  }
 0x129   : > { %1921 = vmatmul.mubr.msk.f32.gmra.mrb[2].mxu1 %vm456_vm1, %v623_v33  ;;  %v2741_v33 = vpack.c.bf16 %v431_v31, %v429_v30 }
 0x12a   : > { %720 = vmatprep.mubr.f32.mxu1 %v2467_v0  ;;  %1973 = vmatpush1.bf16.msra.mxu1 %v2673_v34 }
 0x12b   : > { %1975 = vmatprep.subr.bf16.mxu1 %v2676_v35  ;;  %1359 = vperm.xlu1 %2303, %v1946_v17  }
 0x12d   : > { %1922 = vmatmul.mubr.msk.f32.gmra.mrb[4].mxu1 %vm456_vm1, %v624_v40  ;;  %v2744_v40 = vpack.c.bf16 %v430_v37, %v428_v36 }
 0x12e   : > { %726 = vmatprep.mubr.f32.mxu1 %v2467_v0  ;;  %1977 = vmatpush1.bf16.msra.mxu1 %v2684_v41 }
 0x12f   : > { %1979 = vmatprep.subr.bf16.mxu1 %v2687_v42  ;;  %1369 = vperm.xlu1 %2303, %v1948_v18  }
 0x131   : > { %1923 = vmatmul.mubr.msk.f32.gmra.mrb[6].mxu1 %vm456_vm1, %v625_v47  ;;  %v439_v47 = vld [vmem:[#allocation2 + $0x1b8] sm:$0xff] }
 0x132   : > { %1981 = vmatpush1.bf16.msra.mxu1 %v2695_v48  ;;  %v2753_v51 = vpack.c.bf16 %v439_v47, %v437_v46  ;;  %v745_v47 = vpop.permute.xlu1 %744 }
 0x133   : > { %1983 = vmatprep.subr.bf16.mxu1 %v2698_v49  ;;  %1554 = vperm.xlu1 %2303, %v1952_v19   ;;  %v755_v19 = vpop.permute.xlu0 %754 }
 0x136   : > { %1985 = vmatpush1.bf16.msra.mxu1 %v2702_v54 }
 0x137   : > { %1987 = vmatprep.subr.bf16.mxu1 %v2705_v55 }
 0x13a   : > { %1989 = vmatpush1.bf16.msra.mxu1 %v2708_v60 }
 0x13b   : > { %1991 = vmatprep.subr.bf16.mxu1 %v2711_v61 }
 0x13e   : > { %1993 = vmatpush1.bf16.msra.mxu1 %v2714_v3 }
 0x13f   : > { %1995 = vmatprep.subr.bf16.mxu1 %v2717_v4 }
 0x142   : > { %1997 = vmatpush1.bf16.msra.mxu1 %v2720_v9 }
 0x143   : > { %1999 = vmatprep.subr.bf16.mxu1 %v2723_v10 }
 0x146   : > { %2001 = vmatpush1.bf16.msra.mxu1 %v2726_v15 }
 0x147   : > { %2003 = vmatprep.subr.bf16.mxu1 %v2729_v16 }
 0x14a   : > { %2005 = vmatpush1.bf16.msra.mxu1 %v2732_v21 }
 0x14b   : > { %2007 = vmatprep.subr.bf16.mxu1 %v2735_v22 }
 0x14e   : > { %2009 = vmatpush1.bf16.msra.mxu1 %v2738_v32 }
 0x14f   : > { %2011 = vmatprep.subr.bf16.mxu1 %v2741_v33 }
 0x152   : > { %2013 = vmatpush1.bf16.msra.mxu1 %v2744_v40 }
 0x153   : > { %2015 = vmatprep.subr.bf16.mxu1 %v2747_v43 }
 0x156   : > { %2017 = vmatpush1.bf16.msra.mxu1 %v2750_v50 }
 0x157   : > { %2019 = vmatprep.subr.bf16.mxu1 %v2753_v51 }
 0x15a   : > { %2021 = vmatpush1.bf16.msra.mxu1 %v2756_v58 }
 0x15b   : > { %2023 = vmatprep.subr.bf16.mxu1 %v2759_v59 }
 0x15e   : > { %2025 = vmatpush1.bf16.msra.mxu1 %v2762_v5 }
 0x15f   : > { %2027 = vmatprep.subr.bf16.mxu1 %v2765_v6 }
 0x162   : > { %2029 = vmatpush1.bf16.msra.mxu1 %v2769_v11 }
 0x1a0   : > { %v750_v14 = vpop.permute.xlu1 %749 }
 0x1f8   : > { %v710_v20 = vpop.f32.mrb[0].mxu1 }
 0x1f9   : > { %v712_v26 = vpop.f32.mrb[1].mxu1 }
 0x1fa   : > { %821 = vmatprep.mubr.f32.mxu1 %v712_v26 }
 0x1fb   : > { %822 = vmatmul.mubr.f32.vlgmr.msra.gmra.mrb[8].mxu1 %v710_v20 }
 0x1fc   : > { %v716_v29 = vpop.f32.mrb[2].mxu1 }
 0x1fd   : > { %v718_v30 = vpop.f32.mrb[3].mxu1 }
 0x1fe   : > { %827 = vmatprep.mubr.f32.mxu1 %v718_v30 }
 0x1ff   : > { %828 = vmatmul.mubr.f32.gmra.mrb[10].mxu1 %v716_v29 }
 0x200   : > { %v722_v31 = vpop.f32.mrb[4].mxu1 }
 0x201   : > { %v724_v36 = vpop.f32.mrb[5].mxu1 }
 0x202   : > { %833 = vmatprep.mubr.f32.mxu1 %v724_v36 }
 0x203   : > { %834 = vmatmul.mubr.f32.gmra.mrb[12].mxu1 %v722_v31 }
 0x204   : > { %v728_v37 = vpop.f32.mrb[6].mxu1 }
 0x205   : > { %v730_v38 = vpop.f32.mrb[7].mxu1 }
 0x206   : > { %839 = vmatprep.mubr.f32.mxu1 %v730_v38 }
 0x207   : > { %840 = vmatmul.mubr.f32.gmra.mrb[14].mxu1 %v728_v37 }
 0x208   : > { %1327 = vmatprep.mubr.f32.mxu1 %v2467_v0 }
 0x2ce   : > { %v823_v39 = vpop.f32.mrb[8].mxu1 }
 0x2cf   : > { %v825_v44 = vpop.f32.mrb[9].mxu1  ;;  %v824_v46 = vadd.f32 %v823_v39, %v740_v45 }
 0x2d0   : > { %v826_v52 = vadd.f32 %v825_v44, %v740_v45 }
 0x2d1   : > { %v846_v63 = vmax.f32 %v824_v46, 0.0  ;;  %v854_v46 = vld [vmem:[%s3068_s7] sm:$0xff] }
 0x2d2   : > { %v829_v53 = vpop.f32.mrb[10].mxu1  ;;  %v847_v2 = vmax.f32 %v826_v52, 0.0 }
 0x2d3   : > { %v830_v56 = vadd.f32 %v829_v53, %v745_v47  ;;  %v831_v57 = vpop.f32.mrb[11].mxu1  ;;  %v934_v53 = vpop.permute.xlu1 %933 }
 0x2d4   : > { %v832_v62 = vadd.f32 %v831_v57, %v745_v47 }
 0x2d5   : > { %v848_v1 = vmax.f32 %v830_v56, 0.0 }
 0x2d6   : > { %v849_v7 = vmax.f32 %v832_v62, 0.0  ;;  %v835_v8 = vpop.f32.mrb[12].mxu1 }
 0x2d7   : > { %v2032_v12 = vpack.c.bf16 %v848_v1, %v846_v63  ;;  %v837_v13 = vpop.f32.mrb[13].mxu1  ;;  %v836_v18 = vadd.f32 %v835_v8, %v750_v14 }
 0x2d8   : > { %v2030_v17 = vpack.c.bf16 %v849_v7, %v847_v2  ;;  %v838_v20 = vadd.f32 %v837_v13, %v750_v14 }
 0x2d9   : > { %v850_v36 = vmax.f32 %v836_v18, 0.0 }
 0x2da   : > { %v841_v26 = vpop.f32.mrb[14].mxu1  ;;  %2031 = vmatprep.subr.bf16.mxu0 %v2030_v17  ;;  %v851_v38 = vmax.f32 %v838_v20, 0.0 }
 0x2db   : > { %v842_v29 = vadd.f32 %v841_v26, %v755_v19  ;;  %v843_v30 = vpop.f32.mrb[15].mxu1  ;;  %2033 = vmatpush1.bf16.msra.mxu0 %v2032_v12 }
 0x2dc   : > { %v844_v31 = vadd.f32 %v843_v30, %v755_v19 }
 0x2dd   : > { %v852_v37 = vmax.f32 %v842_v29, 0.0 }
 0x2de   : > { %v853_v39 = vmax.f32 %v844_v31, 0.0 }
 0x2df   : > { %v2036_v44 = vpack.c.bf16 %v852_v37, %v850_v36 }
 0x2e0   : > { %v2034_v45 = vpack.c.bf16 %v853_v39, %v851_v38  ;;  %v1928_v39 = vld [vmem:[%s3064_s3 + $0x8] sm:$0xff] }
 0x2e2   : > { %2035 = vmatprep.subr.bf16.mxu0 %v2034_v45 }
 0x2e3   : > { %2037 = vmatpush1.bf16.msra.mxu0 %v2036_v44  ;;  %v1927_v44 = vld [vmem:[%s3063_s2 + $0x8] sm:$0xff] }
 0x2e4   : > { %2039 = vmatprep.subr.bf16.mxu0 %v2651_v24 }
 0x2e6   : > { %1924 = vmatmul.mubr.msk.f32.vlgmr.msra.gmra.mrb[2].mxu0 %vm855_vm2, %v854_v46  ;;  %v1236_v46 = vpop.permute.xlu0 %1235 }
 0x2e7   : > { %2041 = vmatpush1.bf16.msra.mxu0 %v2658_v27 }
 0x2e8   : > { %2043 = vmatprep.subr.bf16.mxu0 %v2662_v28 }
 0x2eb   : > { %2045 = vmatpush1.bf16.msra.mxu0 %v2673_v34 }
 0x2ec   : > { %2047 = vmatprep.subr.bf16.mxu0 %v2676_v35 }
 0x2ef   : > { %2049 = vmatpush1.bf16.msra.mxu0 %v2684_v41 }
 0x2f0   : > { %2051 = vmatprep.subr.bf16.mxu0 %v2687_v42 }
 0x2f3   : > { %2053 = vmatpush1.bf16.msra.mxu0 %v2695_v48 }
 0x2f4   : > { %2055 = vmatprep.subr.bf16.mxu0 %v2698_v49 }
 0x2f7   : > { %2057 = vmatpush1.bf16.msra.mxu0 %v2702_v54 }
 0x2f8   : > { %2059 = vmatprep.subr.bf16.mxu0 %v2705_v55 }
 0x2fb   : > { %2061 = vmatpush1.bf16.msra.mxu0 %v2708_v60 }
 0x2fc   : > { %2063 = vmatprep.subr.bf16.mxu0 %v2711_v61 }
 0x2ff   : > { %2065 = vmatpush1.bf16.msra.mxu0 %v2714_v3 }
 0x300   : > { %2067 = vmatprep.subr.bf16.mxu0 %v2717_v4 }
 0x303   : > { %2069 = vmatpush1.bf16.msra.mxu0 %v2720_v9 }
 0x304   : > { %2071 = vmatprep.subr.bf16.mxu0 %v2723_v10 }
 0x307   : > { %2073 = vmatpush1.bf16.msra.mxu0 %v2726_v15 }
 0x308   : > { %2075 = vmatprep.subr.bf16.mxu0 %v2729_v16 }
 0x30b   : > { %2077 = vmatpush1.bf16.msra.mxu0 %v2732_v21 }
 0x30c   : > { %2079 = vmatprep.subr.bf16.mxu0 %v2735_v22 }
 0x30f   : > { %2081 = vmatpush1.bf16.msra.mxu0 %v2738_v32 }
 0x310   : > { %2083 = vmatprep.subr.bf16.mxu0 %v2741_v33 }
 0x313   : > { %2085 = vmatpush1.bf16.msra.mxu0 %v2744_v40 }
 0x314   : > { %2087 = vmatprep.subr.bf16.mxu0 %v2747_v43 }
 0x317   : > { %2089 = vmatpush1.bf16.msra.mxu0 %v2750_v50 }
 0x318   : > { %2091 = vmatprep.subr.bf16.mxu0 %v2753_v51 }
 0x31b   : > { %2093 = vmatpush1.bf16.msra.mxu0 %v2756_v58 }
 0x31c   : > { %2095 = vmatprep.subr.bf16.mxu0 %v2759_v59 }
 0x31f   : > { %2097 = vmatpush1.bf16.msra.mxu0 %v2762_v5 }
 0x320   : > { %2099 = vmatprep.subr.bf16.mxu0 %v2765_v6 }
 0x323   : > { %2101 = vmatpush1.bf16.msra.mxu0 %v2769_v11 }
 0x3b9   : > { %v925_v47 = vpop.f32.mrb[2].mxu0 }
 0x3ba   : > { %v927_v52 = vpop.f32.mrb[3].mxu0 }
 0x3bb   : > { %1000 = vmatprep.mubr.f32.mxu0 %v927_v52 }
 0x3bc   : > { %1001 = vmatmul.mubr.f32.vlgmr.msra.gmra.mrb[4].mxu0 %v925_v47 }
 0x3bd   : > { %1150 = vmatprep.mubr.f32.mxu0 %v2467_v0 }
 0x48f   : > { %v1002_v56 = vpop.f32.mrb[4].mxu0 }
 0x490   : > { %v1003_v57 = vadd.f32 %v1002_v56, %v934_v53  ;;  %v1004_v62 = vpop.f32.mrb[5].mxu0  ;;  %v1938_v56 = vld [vmem:[%s3066_s5 + $0x30] sm:$0xff] }
 0x491   : > { %v1005_v63 = vadd.f32 %v1004_v62, %v934_v53 }
 0x492   : > { %v2828_v1 = vadd.f32 2.0, %v1003_v57  ;;  %v1041_v18 = vrot.slane %v1003_v57, 4  ;;  %v1939_v57 = vld [vmem:[%s3066_s5 + $0x38] sm:$0xff] }
 0x493   : > { %v2830_v2 = vadd.f32 2.0, %v1005_v63  ;;  %v1042_v19 = vrot.slane %v1005_v63, 4 }
 0x494   : > { %v1925_v7 = vmul.f32 -1.442695, %v2828_v1  ;;  %v1045_v20 = vadd.f32 %v1041_v18, %v2653_v25 }
 0x495   : > { %v1926_v8 = vmul.f32 -1.442695, %v2830_v2  ;;  %v1046_v29 = vadd.f32 %v1042_v19, %v2649_v23  ;;  %v1360_v19 = vpop.permute.xlu1 %1359 }
 0x496   : > { %2304 = vpow2.f32 %v1925_v7 }
 0x497   : > { %2306 = vpow2.f32 %v1926_v8 }
 0x4a0   : > { %v2305_v12 = vpop.eup %2304 }
 0x4a1   : > { %v2307_v13 = vpop.eup %2306  ;;  %v1015_v14 = vadd.f32 1.0, %v2305_v12 }
 0x4a2   : > { %v1016_v17 = vadd.f32 1.0, %v2307_v13 }
 0x4a3   : > { %2308 = vrcp.f32 %v1015_v14 }
 0x4a4   : > { %2310 = vrcp.f32 %v1016_v17 }
 0x4ad   : > { %v2309_v26 = vpop.eup %2308 }
 0x4ae   : > { %v2311_v30 = vpop.eup %2310  ;;  %v1047_v31 = vmul.f32 %v2309_v26, %v1045_v20  ;;  %v1365_v26 = vpop.permute.xlu0 %1364 }
 0x4af   : > { %v1048_v36 = vmul.f32 %v2311_v30, %v1046_v29 }
 0x4b0   : > { %v1077_v38 = vrot.slane %v1047_v31, 4 }
 0x4b1   : > { %v1078_v37 = vrot.slane %v1048_v36, 4 }
 0x4b3   : > { %1929 = vmatprep.subr.msk.mxu0 %vm460_vm0, %v1078_v37 }
 0x4b4   : > { %1930 = vmatpush1.msk.msra.mxu0 %vm460_vm0, %v1077_v38 }
 0x4b5   : > { %1931 = vmatmul.mubr.msk.f32.vlgmr.msra.gmra.mrb[6].mxu0 %vm456_vm1, %v1928_v39  ;;  %1932 = vmatprep.subr.msk.mxu0 %vm460_vm0, %v2649_v23  ;;  %v1936_v23 = vld [vmem:[%s3066_s5 + $0x20] sm:$0xff] }
 0x4b6   : > { %1933 = vmatpush1.msk.msra.mxu0 %vm460_vm0, %v2653_v25  ;;  %1224 = vmatprep.mubr.f32.mxu0 %v2467_v0  ;;  %v1937_v25 = vld [vmem:[%s3066_s5 + $0x28] sm:$0xff] }
 0x4bd   : > { %1934 = vmatmul.mubr.msk.f32.vlgmr.msra.gmra.mrb[6].mxu0 %vm456_vm1, %v1927_v44 }
 0x4be   : > { %1543 = vmatprep.mubr.f32.mxu0 %v2467_v0 }
 0x590   : > { %v1226_v45 = vpop.f32.mrb[6].mxu0 }
 0x591   : > { %v1228_v47 = vpop.f32.mrb[7].mxu0  ;;  %v2854_v53 = vadd.f32 %v1236_v46, %v1226_v45 }
 0x592   : > { %v2852_v52 = vadd.f32 %v1236_v46, %v1228_v47 }
 0x594   : > { %1940 = vmatprep.subr.msk.mxu1 %vm460_vm0, %v2852_v52 }
 0x595   : > { %1941 = vmatpush1.msk.msra.mxu1 %vm460_vm0, %v2854_v53 }
 0x596   : > { %1942 = vmatmul.mubr.msk.f32.vlgmr.msra.gmra.mrb[16].mxu1 %vm456_vm1, %v1936_v23  ;;  %2103 = vmatprep.subr.bf16.mxu1 %v2651_v24 }
 0x597   : > { %1333 = vmatprep.mubr.f32.mxu1 %v2467_v0  ;;  %2105 = vmatpush1.bf16.msra.mxu1 %v2658_v27 }
 0x598   : > { %2107 = vmatprep.subr.bf16.mxu1 %v2662_v28 }
 0x59a   : > { %1943 = vmatmul.mubr.msk.f32.gmra.mrb[18].mxu1 %vm456_vm1, %v1937_v25  ;;  %v1370_v25 = vpop.permute.xlu1 %1369 }
 0x59b   : > { %1339 = vmatprep.mubr.f32.mxu1 %v2467_v0  ;;  %2109 = vmatpush1.bf16.msra.mxu1 %v2673_v34 }
 0x59c   : > { %2111 = vmatprep.subr.bf16.mxu1 %v2676_v35 }
 0x59e   : > { %1944 = vmatmul.mubr.msk.f32.gmra.mrb[20].mxu1 %vm456_vm1, %v1938_v56 }
 0x59f   : > { %1345 = vmatprep.mubr.f32.mxu1 %v2467_v0  ;;  %2113 = vmatpush1.bf16.msra.mxu1 %v2684_v41 }
 0x5a0   : > { %2115 = vmatprep.subr.bf16.mxu1 %v2687_v42 }
 0x5a2   : > { %1945 = vmatmul.mubr.msk.f32.gmra.mrb[22].mxu1 %vm456_vm1, %v1939_v57 }
 0x5a3   : > { %2117 = vmatpush1.bf16.msra.mxu1 %v2695_v48 }
 0x5a4   : > { %2119 = vmatprep.subr.bf16.mxu1 %v2698_v49 }
 0x5a7   : > { %2121 = vmatpush1.bf16.msra.mxu1 %v2702_v54 }
 0x5a8   : > { %2123 = vmatprep.subr.bf16.mxu1 %v2705_v55 }
 0x5ab   : > { %2125 = vmatpush1.bf16.msra.mxu1 %v2708_v60 }
 0x5ac   : > { %2127 = vmatprep.subr.bf16.mxu1 %v2711_v61 }
 0x5af   : > { %2129 = vmatpush1.bf16.msra.mxu1 %v2714_v3 }
 0x5b0   : > { %2131 = vmatprep.subr.bf16.mxu1 %v2717_v4 }
 0x5b3   : > { %2133 = vmatpush1.bf16.msra.mxu1 %v2720_v9 }
 0x5b4   : > { %2135 = vmatprep.subr.bf16.mxu1 %v2723_v10 }
 0x5b7   : > { %2137 = vmatpush1.bf16.msra.mxu1 %v2726_v15 }
 0x5b8   : > { %2139 = vmatprep.subr.bf16.mxu1 %v2729_v16 }
 0x5bb   : > { %2141 = vmatpush1.bf16.msra.mxu1 %v2732_v21 }
 0x5bc   : > { %2143 = vmatprep.subr.bf16.mxu1 %v2735_v22 }
 0x5bf   : > { %2145 = vmatpush1.bf16.msra.mxu1 %v2738_v32 }
 0x5c0   : > { %2147 = vmatprep.subr.bf16.mxu1 %v2741_v33 }
 0x5c3   : > { %2149 = vmatpush1.bf16.msra.mxu1 %v2744_v40 }
 0x5c4   : > { %2151 = vmatprep.subr.bf16.mxu1 %v2747_v43 }
 0x5c7   : > { %2153 = vmatpush1.bf16.msra.mxu1 %v2750_v50 }
 0x5c8   : > { %2155 = vmatprep.subr.bf16.mxu1 %v2753_v51 }
 0x5cb   : > { %2157 = vmatpush1.bf16.msra.mxu1 %v2756_v58 }
 0x5cc   : > { %2159 = vmatprep.subr.bf16.mxu1 %v2759_v59 }
 0x5cf   : > { %2161 = vmatpush1.bf16.msra.mxu1 %v2762_v5 }
 0x5d0   : > { %2163 = vmatprep.subr.bf16.mxu1 %v2765_v6 }
 0x5d3   : > { %2165 = vmatpush1.bf16.msra.mxu1 %v2769_v11 }
 0x669   : > { %v1329_v0 = vpop.f32.mrb[16].mxu1 }
 0x66a   : > { %v1331_v62 = vpop.f32.mrb[17].mxu1 }
 0x66b   : > { %1441 = vmatprep.mubr.f32.mxu1 %v1331_v62 }
 0x66c   : > { %1442 = vmatmul.mubr.f32.vlgmr.msra.gmra.mrb[24].mxu1 %v1329_v0  ;;  %v1375_v0 = vpop.permute.xlu0 %1374 }
 0x66d   : > { %v1335_v63 = vpop.f32.mrb[18].mxu1 }
 0x66e   : > { %v1337_v7 = vpop.f32.mrb[19].mxu1 }
 0x66f   : > { %1447 = vmatprep.mubr.f32.mxu1 %v1337_v7 }
 0x670   : > { %1448 = vmatmul.mubr.f32.gmra.mrb[26].mxu1 %v1335_v63 }
 0x671   : > { %v1341_v8 = vpop.f32.mrb[20].mxu1 }
 0x672   : > { %v1343_v12 = vpop.f32.mrb[21].mxu1 }
 0x673   : > { %1453 = vmatprep.mubr.f32.mxu1 %v1343_v12 }
 0x674   : > { %1454 = vmatmul.mubr.f32.gmra.mrb[28].mxu1 %v1341_v8 }
 0x675   : > { %v1347_v13 = vpop.f32.mrb[22].mxu1 }
 0x676   : > { %v1349_v14 = vpop.f32.mrb[23].mxu1 }
 0x677   : > { %1459 = vmatprep.mubr.f32.mxu1 %v1349_v14 }
 0x678   : > { %1460 = vmatmul.mubr.f32.gmra.mrb[30].mxu1 %v1347_v13 }
 0x73f   : > { %v1443_v17 = vpop.f32.mrb[24].mxu1 }
 0x740   : > { %v1445_v18 = vpop.f32.mrb[25].mxu1  ;;  %v1444_v20 = vadd.f32 %v1443_v17, %v1360_v19 }
 0x741   : > { %v1446_v29 = vadd.f32 %v1445_v18, %v1360_v19 }
 0x742   : > { %v1466_v38 = vmax.f32 %v1444_v20, 0.0 }
 0x743   : > { %v1449_v30 = vpop.f32.mrb[26].mxu1  ;;  %v1467_v44 = vmax.f32 %v1446_v29, 0.0  ;;  %v1021_v29 = vmin.f32 %v2828_v1, 0.0 }
 0x744   : > { %v1450_v31 = vadd.f32 %v1449_v30, %v1365_v26  ;;  %v1451_v36 = vpop.f32.mrb[27].mxu1  ;;  %v1022_v30 = vmin.f32 %v2830_v2, 0.0 }
 0x745   : > { %v1452_v37 = vadd.f32 %v1451_v36, %v1365_v26  ;;  %v1950_v26 = vld [vmem:[%s3068_s7 + $0x8] sm:$0xff] }
 0x746   : > { %v1468_v39 = vmax.f32 %v1450_v31, 0.0 }
 0x747   : > { %v1469_v45 = vmax.f32 %v1452_v37, 0.0  ;;  %v1455_v46 = vpop.f32.mrb[28].mxu1 }
 0x748   : > { %v2168_v47 = vpack.c.bf16 %v1468_v39, %v1466_v38  ;;  %v1457_v23 = vpop.f32.mrb[29].mxu1  ;;  %v1456_v57 = vadd.f32 %v1455_v46, %v1370_v25  ;;  %v1693_v46 = vmul.f32 %v2852_v52, %v2852_v52 }
 0x749   : > { %v2166_v56 = vpack.c.bf16 %v1469_v45, %v1467_v44  ;;  %v1458_v62 = vadd.f32 %v1457_v23, %v1370_v25  ;;  %v1692_v44 = vmul.f32 %v2854_v53, %v2854_v53 }
 0x74a   : > { %v1470_v13 = vmax.f32 %v1456_v57, 0.0  ;;  %v1701_v57 = vsel %vm460_vm0, %v1693_v46, 0.0 }
 0x74b   : > { %v1461_v63 = vpop.f32.mrb[30].mxu1  ;;  %2167 = vmatprep.subr.bf16.mxu0 %v2166_v56  ;;  %v1471_v17 = vmax.f32 %v1458_v62, 0.0  ;;  %v1694_v56 = vsel %vm460_vm0, %v1692_v44, 0.0 }
 0x74c   : > { %v1462_v7 = vadd.f32 %v1461_v63, %v1375_v0  ;;  %v1463_v8 = vpop.f32.mrb[31].mxu1  ;;  %2169 = vmatpush1.bf16.msra.mxu0 %v2168_v47 }
 0x74d   : > { %v1464_v12 = vadd.f32 %v1463_v8, %v1375_v0  ;;  %v1695_v8 = vrot.slane %v1694_v56, 4 }
 0x74e   : > { %v1472_v14 = vmax.f32 %v1462_v7, 0.0 }
 0x74f   : > { %v1473_v18 = vmax.f32 %v1464_v12, 0.0  ;;  %v1702_v12 = vrot.slane %v1701_v57, 4 }
 0x750   : > { %v2172_v19 = vpack.c.bf16 %v1472_v14, %v1470_v13 }
 0x751   : > { %v2170_v20 = vpack.c.bf16 %v1473_v18, %v1471_v17 }
 0x753   : > { %2171 = vmatprep.subr.bf16.mxu0 %v2170_v20 }
 0x754   : > { %2173 = vmatpush1.bf16.msra.mxu0 %v2172_v19 }
 0x755   : > { %2175 = vmatprep.subr.bf16.mxu0 %v2651_v24 }
 0x757   : > { %1951 = vmatmul.mubr.msk.f32.vlgmr.msra.gmra.mrb[8].mxu0 %vm855_vm2, %v1950_v26  ;;  %v1696_v26 = vadd.f32 %v1695_v8, %v1694_v56 }
 0x758   : > { %2177 = vmatpush1.bf16.msra.mxu0 %v2658_v27 }
 0x759   : > { %2179 = vmatprep.subr.bf16.mxu0 %v2662_v28  ;;  %v1023_v28 = vand.u32 2147483647, %v2828_v1 }
 0x75c   : > { %2181 = vmatpush1.bf16.msra.mxu0 %v2673_v34  ;;  %v1024_v34 = vand.u32 2147483647, %v2830_v2 }
 0x75d   : > { %2183 = vmatprep.subr.bf16.mxu0 %v2676_v35  ;;  %v1025_v35 = vsub.f32 0.0, %v1023_v28 }
 0x760   : > { %2185 = vmatpush1.bf16.msra.mxu0 %v2684_v41  ;;  %v1026_v41 = vsub.f32 0.0, %v1024_v34 }
 0x761   : > { %2187 = vmatprep.subr.bf16.mxu0 %v2687_v42  ;;  %v1027_v42 = vmul.f32 1.442695, %v1025_v35 }
 0x763   : > { %2312 = vpow2.f32 %v1027_v42 }
 0x764   : > { %2189 = vmatpush1.bf16.msra.mxu0 %v2695_v48  ;;  %v1029_v48 = vmul.f32 1.442695, %v1026_v41 }
 0x765   : > { %2191 = vmatprep.subr.bf16.mxu0 %v2698_v49 }
 0x766   : > { %2314 = vpow2.f32 %v1029_v48 }
 0x768   : > { %2193 = vmatpush1.bf16.msra.mxu0 %v2702_v54 }
 0x769   : > { %2195 = vmatprep.subr.bf16.mxu0 %v2705_v55 }
 0x76c   : > { %2197 = vmatpush1.bf16.msra.mxu0 %v2708_v60 }
 0x76d   : > { %2199 = vmatprep.subr.bf16.mxu0 %v2711_v61  ;;  %v2313_v49 = vpop.eup %2312  ;;  %v1555_v61 = vpop.permute.xlu1 %1554 }
 0x76e   : > { %v1031_v55 = vadd.f32 1.0, %v2313_v49 }
 0x770   : > { %2201 = vmatpush1.bf16.msra.mxu0 %v2714_v3  ;;  %v2315_v54 = vpop.eup %2314  ;;  %2316 = vlog2.f32 %v1031_v55  ;;  %v1697_v55 = vrot.slane %v1696_v26, 2 }
 0x771   : > { %2203 = vmatprep.subr.bf16.mxu0 %v2717_v4  ;;  %v1032_v60 = vadd.f32 1.0, %v2315_v54 }
 0x773   : > { %2318 = vlog2.f32 %v1032_v60 }
 0x774   : > { %2205 = vmatpush1.bf16.msra.mxu0 %v2720_v9 }
 0x775   : > { %2207 = vmatprep.subr.bf16.mxu0 %v2723_v10 }
 0x778   : > { %2209 = vmatpush1.bf16.msra.mxu0 %v2726_v15 }
 0x779   : > { %2211 = vmatprep.subr.bf16.mxu0 %v2729_v16 }
 0x77c   : > { %2213 = vmatpush1.bf16.msra.mxu0 %v2732_v21 }
 0x77d   : > { %2215 = vmatprep.subr.bf16.mxu0 %v2735_v22 }
 0x780   : > { %2217 = vmatpush1.bf16.msra.mxu0 %v2738_v32 }
 0x781   : > { %2219 = vmatprep.subr.bf16.mxu0 %v2741_v33 }
 0x784   : > { %2221 = vmatpush1.bf16.msra.mxu0 %v2744_v40 }
 0x785   : > { %2223 = vmatprep.subr.bf16.mxu0 %v2747_v43 }
 0x788   : > { %2225 = vmatpush1.bf16.msra.mxu0 %v2750_v50 }
 0x789   : > { %2227 = vmatprep.subr.bf16.mxu0 %v2753_v51 }
 0x78c   : > { %2229 = vmatpush1.bf16.msra.mxu0 %v2756_v58  ;;  %v2317_v58 = vpop.eup %2316 }
 0x78d   : > { %2231 = vmatprep.subr.bf16.mxu0 %v2759_v59  ;;  %v2319_v59 = vpop.eup %2318 }
 0x790   : > { %2233 = vmatpush1.bf16.msra.mxu0 %v2762_v5  ;;  %v1034_v5 = vmul.f32 0.6931472, %v2317_v58 }
 0x791   : > { %2235 = vmatprep.subr.bf16.mxu0 %v2765_v6  ;;  %v1036_v6 = vmul.f32 0.6931472, %v2319_v59 }
 0x792   : > { %v1037_v37 = vsub.f32 %v1021_v29, %v1034_v5 }
 0x793   : > { %v1038_v38 = vsub.f32 %v1022_v30, %v1036_v6 }
 0x794   : > { %2237 = vmatpush1.bf16.msra.mxu0 %v2769_v11  ;;  %v1051_v1 = vrot.slane %v1037_v37, 4 }
 0x795   : > { %v1052_v25 = vrot.slane %v1038_v38, 4 }
 0x796   : > { %v1055_v63 = vsel %vm460_vm0, %v1051_v1, 0.0 }
 0x797   : > { %v1062_v7 = vsel %vm460_vm0, %v1052_v25, 0.0  ;;  %v1056_v17 = vrot.slane %v1055_v63, 4 }
 0x798   : > { %v1063_v18 = vrot.slane %v1062_v7, 4 }
 0x799   : > { %v1057_v42 = vadd.f32 %v1056_v17, %v1055_v63 }
 0x79a   : > { %v1064_v48 = vadd.f32 %v1063_v18, %v1062_v7 }
 0x82a   : > { %v1545_v24 = vpop.f32.mrb[8].mxu0 }
 0x82b   : > { %v1547_v27 = vpop.f32.mrb[9].mxu0 }
 0x82c   : > { %1621 = vmatprep.mubr.f32.mxu0 %v1547_v27  ;;  %v1703_v27 = vadd.f32 %v1702_v12, %v1701_v57 }
 0x82d   : > { %1622 = vmatmul.mubr.f32.vlgmr.msra.gmra.mrb[10].mxu0 %v1545_v24 }
 0x900   : > { %v1623_v3 = vpop.f32.mrb[10].mxu0 }
 0x901   : > { %v1624_v4 = vadd.f32 %v1623_v3, %v1555_v61  ;;  %v1625_v9 = vpop.f32.mrb[11].mxu0 }
 0x902   : > { %v1626_v10 = vadd.f32 %v1625_v9, %v1555_v61 }
 0x903   : > { %v2949_v15 = vadd.f32 2.0, %v1624_v4  ;;  %v1662_v0 = vrot.slane %v1624_v4, 4  ;;  %v1704_v4 = vrot.slane %v1703_v27, 2 }
 0x904   : > { %v2951_v16 = vadd.f32 2.0, %v1626_v10  ;;  %v1663_v62 = vrot.slane %v1626_v10, 4 }
 0x905   : > { %v1953_v21 = vmul.f32 -1.442695, %v2949_v15  ;;  %v1644_v22 = vand.u32 2147483647, %v2949_v15  ;;  %v1666_v13 = vadd.f32 %v1662_v0, %v2854_v53  ;;  %v1642_v60 = vmin.f32 %v2949_v15, 0.0 }
 0x906   : > { %v1954_v32 = vmul.f32 -1.442695, %v2951_v16  ;;  %v1645_v33 = vand.u32 2147483647, %v2951_v16  ;;  %v1667_v19 = vadd.f32 %v1663_v62, %v2852_v52  ;;  %v1643_v9 = vmin.f32 %v2951_v16, 0.0 }
 0x907   : > { %2320 = vpow2.f32 %v1953_v21  ;;  %v1646_v40 = vsub.f32 0.0, %v1644_v22 }
 0x908   : > { %2322 = vpow2.f32 %v1954_v32  ;;  %v1647_v43 = vsub.f32 0.0, %v1645_v33 }
 0x909   : > { %v1648_v50 = vmul.f32 1.442695, %v1646_v40 }
 0x90a   : > { %v1650_v51 = vmul.f32 1.442695, %v1647_v43 }
 0x90b   : > { %2324 = vpow2.f32 %v1648_v50 }
 0x90c   : > { %2326 = vpow2.f32 %v1650_v51 }
 0x911   : > { %v2321_v11 = vpop.eup %2320 }
 0x912   : > { %v2323_v31 = vpop.eup %2322  ;;  %v1636_v36 = vadd.f32 1.0, %v2321_v11 }
 0x913   : > { %v1637_v39 = vadd.f32 1.0, %v2323_v31 }
 0x914   : > { %2328 = vrcp.f32 %v1636_v36 }
 0x915   : > { %v2325_v45 = vpop.eup %2324  ;;  %2330 = vrcp.f32 %v1637_v39 }
 0x916   : > { %v2327_v47 = vpop.eup %2326  ;;  %v1652_v23 = vadd.f32 1.0, %v2325_v45 }
 0x917   : > { %v1653_v2 = vadd.f32 1.0, %v2327_v47 }
 0x918   : > { %2332 = vlog2.f32 %v1652_v23 }
 0x919   : > { %2334 = vlog2.f32 %v1653_v2 }
 0x91e   : > { %v2329_v14 = vpop.eup %2328 }
 0x91f   : > { %v2331_v20 = vpop.eup %2330  ;;  %v1668_v24 = vmul.f32 %v2329_v14, %v1666_v13 }
 0x920   : > { %v1669_v28 = vmul.f32 %v2331_v20, %v1667_v19 }
 0x921   : > { %v1708_v34 = vmul.f32 %v1668_v24, %v1668_v24  ;;  %v1738_v35 = vsel %vm460_vm0, %v2854_v53, %v1668_v24 }
 0x922   : > { %v2333_v41 = vpop.eup %2332  ;;  %v1709_v49 = vmul.f32 %v1669_v28, %v1669_v28  ;;  %v1739_v54 = vsel %vm460_vm0, %v2852_v52, %v1669_v28  ;;  %1740 = vst [vmem:[%s371_s21] sm:$0xff] %v1738_v35 }
 0x923   : > { %v2335_v53 = vpop.eup %2334  ;;  %v1655_v61 = vmul.f32 0.6931472, %v2333_v41  ;;  %v1712_v3 = vrot.slane %v1708_v34, 4  ;;  %1741 = vst [vmem:[%s371_s21 + $0x8] sm:$0xff] %v1739_v54 }
 0x924   : > { %v1657_v10 = vmul.f32 0.6931472, %v2335_v53  ;;  %v1713_v21 = vrot.slane %v1709_v49, 4 }
 0x925   : > { %2377 = shalt.err (!%p2374_p7)
}
 0x926   : > { %s2378_s21 = scalar_lea.hbm %s2979_s12, 256  ;;  %s2382_s25 = scalar_lea.hbm %s3070_s9, 1024 }
 0x927   : > { %p2379_p8 = scmp.ne.s32.totalorder %s2979_s12, %s2378_s21  ;;  %p2383_p1 = scmp.lt.u32.totalorder %s2979_s12, %s3070_s9 }
 0x928   : > { %p2384_p0 = scmp.lt.u32.totalorder %s2382_s25, %s2378_s21  ;;  %p2386_p6 = scmp.lt.u32.totalorder %s2378_s21, %s2979_s12 }
 0x929   : > { %p2380_p11 = pnand %p2379_p8, %p3084_p9 }
 0x92a   : > { %p2385_p5 = por %p2384_p0, %p2383_p1 }
 0x92b   : > { %p2381_p13 = pneg %p2380_p11 }
 0x92c   : > { %p2387_p10 = por %p2386_p6, %p2385_p5 }
 0x92e   : > { %p2388_p12 = pnand %p2387_p10, %p2381_p13 }
 0x930   : > { %2391 = shalt.err (!%p2388_p12)
}
 0x931   : > { %2246 = dma.vmem_to_hbm [thread:$0]  (%p3084_p9), %s2981_s26, 256, %s2979_s12, %s1766_s18   ;;  %v1658_v52 = vsub.f32 %v1642_v60, %v1655_v61  ;;  %v1716_v15 = vsel %vm460_vm0, %v1712_v3, 0.0  ;;  %v1659_v22 = vsub.f32 %v1643_v9, %v1657_v10  ;;  %v1723_v32 = vsel %vm460_vm0, %v1713_v21, 0.0 }
 0x932   : > { %v1717_v16 = vrot.slane %v1716_v15, 4  ;;  %v1058_v33 = vrot.slane %v1057_v42, 2  ;;  %v1065_v40 = vrot.slane %v1064_v48, 2  ;;  %v1724_v50 = vrot.slane %v1723_v32, 4  ;;  %s1909_s0 = sshll.u32 %s2964_s27, 1  ;;  %s1965_s26 = sshll.u32 %s2548_s17, 5 }
 0x933   : > { %v1672_v43 = vrot.slane %v1658_v52, 4  ;;  %v1698_v51 = vadd.f32 %v1697_v55, %v1696_v26  ;;  %v1705_v58 = vadd.f32 %v1704_v4, %v1703_v27  ;;  %v1673_v5 = vrot.slane %v1659_v22, 4  ;;  %s378_s12 = scalar_lea.vmem [#allocation6], %s1909_s0  ;;  %s3018_s21 = scalar_lea.hbm %s3071_s10, %s1965_s26 }
 0x934   : > { %v1718_v59 = vadd.f32 %v1717_v16, %v1716_v15  ;;  %v1725_v11 = vadd.f32 %v1724_v50, %v1723_v32  ;;  %v1059_v36 = vadd.f32 %v1058_v33, %v1057_v42  ;;  %v1066_v37 = vadd.f32 %v1065_v40, %v1064_v48  ;;  %s1799_s18 = sshll.u32 %s378_s12, 4  ;;  %s1771_s29 = scalar_lea.sflag [#allocation7], %s2964_s27  ;;  %s3020_s18 = int_to_ptr.vmem [resolvable:$true] %s1799_s18 }
 0x935   : > { %v1676_v6 = vsel %vm460_vm0, %v1672_v43, 0.0  ;;  %v1683_v31 = vsel %vm460_vm0, %v1673_v5, 0.0  ;;  %v1699_v44 = vrot.slane %v1698_v51, 1  ;;  %v1706_v45 = vrot.slane %v1705_v58, 1  ;;  %s2392_s30 = scalar_lea.vmem %s3020_s18, 32  ;;  %s2471_s17 = smov [#allocation6]  }
 0x936   : > { %v1677_v29 = vrot.slane %v1676_v6, 4  ;;  %v1719_v30 = vrot.slane %v1718_v59, 2  ;;  %v1684_v38 = vrot.slane %v1683_v31, 4  ;;  %v1726_v39 = vrot.slane %v1725_v11, 2  ;;  %p2393_p2 = scmp.ne.s32.totalorder %s3020_s18, %s2392_s30  ;;  %s2396_s25 = sshll.u32 %s2471_s17, 4  ;;  %s2397_s25 = int_to_ptr.vmem [resolvable:$false] %s2396_s25 }
 0x937   : > { %v1060_v56 = vrot.slane %v1059_v36, 1  ;;  %v1067_v57 = vrot.slane %v1066_v37, 1  ;;  %v1700_v63 = vadd.f32 %v1699_v44, %v1698_v51  ;;  %v1707_v7 = vadd.f32 %v1706_v45, %v1705_v58  ;;  %s2398_s11 = scalar_lea.vmem %s2397_s25, 64  ;;  %p2399_p7 = scmp.lt.s32.totalorder %s3020_s18, %s2397_s25 }
 0x938   : > { %v1678_v46 = vadd.f32 %v1677_v29, %v1676_v6  ;;  %v1720_v47 = vadd.f32 %v1719_v30, %v1718_v59  ;;  %v1685_v23 = vadd.f32 %v1684_v38, %v1683_v31  ;;  %v1727_v1 = vadd.f32 %v1726_v39, %v1725_v11  ;;  %p2394_p3 = pnand %p2393_p2, %p3084_p9  ;;  %p2400_p8 = scmp.lt.s32.totalorder %s2398_s11, %s2392_s30 }
 0x939   : > { %v2470_v17 = vmov 1966171168   ;;  %v1748_v19 = vlaneseq  ;;  %v1061_v28 = vadd.f32 %v1060_v56, %v1059_v36  ;;  %v1068_v34 = vadd.f32 %v1067_v57, %v1066_v37 }
 0x93a   : > { %v1679_v25 = vrot.slane %v1678_v46, 2  ;;  %v1721_v2 = vrot.slane %v1720_v47, 1  ;;  %v1686_v0 = vrot.slane %v1685_v23, 2  ;;  %v1728_v62 = vrot.slane %v1727_v1, 1  ;;  %p2395_p4 = pneg %p2394_p3  ;;  %p2401_p11 = por %p2400_p8, %p2399_p7 }
 0x93b   : > { %v1746_v18 = vunpack.c.l.s4 %v2470_v17  ;;  %v1749_v54 = vshrl.u32 %v1748_v19, 7  ;;  %vm1762_vm3 = vcmp.lt.s32.totalorder %v1748_v19, 256 }
 0x93c   : > { %v1680_v8 = vadd.f32 %v1679_v25, %v1678_v46  ;;  %v1722_v12 = vadd.f32 %v1721_v2, %v1720_v47  ;;  %v1687_v13 = vadd.f32 %v1686_v0, %v1685_v23  ;;  %v1729_v14 = vadd.f32 %v1728_v62, %v1727_v1  ;;  %p2402_p13 = pnand %p2401_p11, %p2395_p4 }
 0x93d   : > { %v1747_v49 = vunpack.c.0.s8 %v1746_v18 }
 0x93e   : > { %v1681_v20 = vrot.slane %v1680_v8, 1  ;;  %v1730_v26 = vadd.f32 %v1722_v12, %v1700_v63  ;;  %v1688_v24 = vrot.slane %v1687_v13, 1  ;;  %v1731_v27 = vadd.f32 %v1729_v14, %v1707_v7 }
 0x93f   : > { %v1750_v9 = vsub.s32 %v1747_v49, %v1749_v54 }
 0x940   : > { %v1682_v35 = vadd.f32 %v1681_v20, %v1680_v8  ;;  %v1732_v41 = vadd.f32 14.703016, %v1730_v26  ;;  %v1689_v42 = vadd.f32 %v1688_v24, %v1687_v13  ;;  %v1733_v48 = vadd.f32 14.703016, %v1731_v27 }
 0x942   : > { %v1690_v53 = vadd.f32 %v1682_v35, %v1061_v28  ;;  %v1734_v55 = vmul.f32 0.5, %v1732_v41  ;;  %v1691_v60 = vadd.f32 %v1689_v42, %v1068_v34  ;;  %v1735_v61 = vmul.f32 0.5, %v1733_v48 }
 0x944   : > { %v1736_v3 = vsub.f32 %v1690_v53, %v1734_v55  ;;  %v1737_v4 = vsub.f32 %v1691_v60, %v1735_v61 }
 0x946   : > { %v1744_v10 = vcombine.low %v1736_v3, %v1737_v4 }
 0x948   : > { %v1751_v21 = vrot.slane %v1744_v10, %v1750_v9 }
 0x94a   : > { %v1758_v52 = vrot.slane %v1751_v21, %v1750_v9 }
 0x94c   : > { %1764 = vst.msk [vmem:[%s378_s12] sm:$0x3] %vm1762_vm3, %v1758_v52 }
 0x94d   : > { %2405 = shalt.err (!%p2402_p13)
}
 0x94e   : > { %s2406_s27 = scalar_lea.hbm %s3018_s21, 32  ;;  %s2410_s12 = scalar_lea.hbm %s3071_s10, 128 }
 0x94f   : > { %p2407_p1 = scmp.ne.s32.totalorder %s3018_s21, %s2406_s27  ;;  %p2411_p6 = scmp.lt.u32.totalorder %s3018_s21, %s3071_s10 }
 0x950   : > { %p2412_p10 = scmp.lt.u32.totalorder %s2410_s12, %s2406_s27  ;;  %p2414_p2 = scmp.lt.u32.totalorder %s2406_s27, %s3018_s21 }
 0x951   : > { %p2408_p0 = pnand %p2407_p1, %p3084_p9 }
 0x952   : > { %p2413_p12 = por %p2412_p10, %p2411_p6 }
 0x953   : > { %p2409_p5 = pneg %p2408_p0 }
 0x954   : > { %p2415_p3 = por %p2414_p2, %p2413_p12 }
 0x956   : > { %p2416_p4 = pnand %p2415_p3, %p2409_p5 }
 0x958   : > { %2419 = shalt.err (!%p2416_p4)
}
 0x959   : > { %2247 = dma.vmem_to_hbm [thread:$0]  (%p3084_p9), %s3020_s18, 32, %s3018_s21, %s1771_s29  }
 0x95a PF: > { %p2263_p7 = scmp.ge.s32.totalorder %s2462_s16, 2  ;;  %s1811_s30 = sand.u32 1, %s2450_s13  }
 0x95b   : > { %p3085_p8 = scmp.ne.s32.totalorder %s3077_s24, 0  ;;  %s1812_s17 = scalar_lea.sflag [#allocation4], %s1811_s30 }
 0x95d   : > { %p2255_p11 = pnand %p2263_p7, %p3085_p8 }
 0x95f   : > { %2441 = dma.done.wait (!%p2255_p11), %s1812_s17, 256  }
 0x960   : > { %2443 = vsyncadd (!%p2255_p11), %s1812_s17, 4294967040  ;;  %s1821_s25 = scalar_lea.sflag [#allocation7], %s1811_s30 }
 0x961   : > { %2445 = dma.done.wait (!%p2255_p11), %s1821_s25, 32  }
 0x962   : > { %2447 = vsyncadd (!%p2255_p11), %s1821_s25, 4294967264  ;;  %p25_p9 = scmp.ge.s32.totalorder %s2552_s19, 6   ;;  %s3086_s13 = smov %s2454_s14 }
 0x963   : > { %s3087_s14 = smov %s2458_s15  ;;  %s3088_s15 = smov %s2563_s22 }
 0x964   : > { %s3089_s16 = smov %s2552_s19  ;;  %27 = sbr.rel (!%p25_p9) target bundleno = 8 (0x8), region = 120 }
 0x96b   :  { %1826 = vsyncpa [#allocation3], 1 }
 0x96c   :  { %1828 = vsyncpa [#allocation3 + $0x1], 1 }
 0x96d   :  { %1829 = vsyncpa [#allocation4], 1 }
 0x96e   :  { %1831 = vsyncpa [#allocation4 + $0x1], 1 }
 0x96f   :  { %1832 = vsyncpa [#allocation7], 1 }
 0x970   :  { %1834 = vsyncpa [#allocation7 + $0x1], 1 }

</bundles_post_ra>
